<compile_context>
chip_gen: v7x
topology: tpu7x:2x2x1
jax: 0.10.0
libtpu: 0.0.40
codegen_flags: <defaults>
</compile_context>

<pallas_src>
import functools

import jax
import jax.numpy as jnp
from jax.experimental import pallas as pl
from jax.experimental.pallas import tpu as pltpu

# Hyper-parameters implied by the module.
P = 2
S = 3
CONTEXT = P + S + 1            # 6 context tokens per example
EMBEDDING_DIM = 100            # logical embedding dim (as in the script)

# Padded (lane-aligned) sizes used by the kernel.
E_PAD = 128                    # 100 -> 128 (zero-padded features)
IN_DIM = CONTEXT * E_PAD       # 768 : clean multiple-of-128 MXU K dimension
MAX_B_TILE = 64                # cap on rows per grid step (bounds static unroll)


def _round_up(x, m):
    return (x + m - 1) // m * m


def _ffnn_kernel(ids_ref, emb_ref, w1_ref, b1_ref, w2_ref, b2_ref, o_ref,
                 act_ref, *, b_tile):
    """One batch tile of the fused embed -> fc1 -> relu -> fc2 forward.

    ids_ref : (B_pad*CONTEXT,)          int32, SMEM (scalar prefetch, flat)
    emb_ref : (V_pad, E_PAD)            f32,  VMEM, resident across grid steps
    w1_ref  : (CONTEXT, E_PAD, H_PAD)   bf16, VMEM, resident
    b1_ref  : (1, H_PAD)                f32
    w2_ref  : (H_PAD, O_PAD)            bf16
    b2_ref  : (1, O_PAD)                f32
    o_ref   : (b_tile, O_PAD)           f32
    act_ref : (CONTEXT, b_tile, E_PAD)  f32 scratch (gathered embeddings)
    """
    base = pl.program_id(0) * (b_tile * CONTEXT)
    h_pad = w1_ref.shape[2]

    # fc1 as a sum over context positions. Gather block c, then immediately
    # issue its partial matmul; block c+1's gathers are independent of block
    # c's matmul, giving the scheduler vst/MXU overlap.
    h = jnp.zeros((b_tile, h_pad), jnp.float32)
    for c in range(CONTEXT):
        for b in range(b_tile):
            tok = ids_ref[base + b * CONTEXT + c]              # SMEM scalar read
            act_ref[c, b:b + 1, :] = emb_ref[pl.ds(tok, 1), :]  # (1, E_PAD) copy
        x_c = act_ref[c].astype(jnp.bfloat16)                   # (b_tile, E_PAD)
        h = h + jnp.dot(x_c, w1_ref[c], preferred_element_type=jnp.float32)

    # bias + relu in f32 on the VPU.
    h = jnp.maximum(h + b1_ref[...], 0.0)

    # fc2
    out = jnp.dot(h.astype(jnp.bfloat16), w2_ref[...],
                  preferred_element_type=jnp.float32)
    o_ref[...] = out + b2_ref[...]


def init_params(key, vocab_size, embedding_dim, hidden_dim, output_dim):
    """Deterministic synthetic params in LOGICAL shapes (match the nn.Module;
    fc weights stored (in, out), i.e. transposed vs torch nn.Linear)."""
    k_emb, k_w1, k_b1, k_w2, k_b2 = jax.random.split(key, 5)
    in_dim = CONTEXT * embedding_dim
    return {
        "embedding": jax.random.normal(k_emb, (vocab_size, embedding_dim), jnp.float32),
        "w1": jax.random.normal(k_w1, (in_dim, hidden_dim), jnp.float32) * 0.05,
        "b1": jax.random.normal(k_b1, (hidden_dim,), jnp.float32) * 0.05,
        "w2": jax.random.normal(k_w2, (hidden_dim, output_dim), jnp.float32) * 0.05,
        "b2": jax.random.normal(k_b2, (output_dim,), jnp.float32) * 0.05,
    }


def prepare_params(params):
    """Pad to lane-aligned kernel shapes and cast matmul weights to bf16."""
    emb, w1, b1, w2, b2 = (params["embedding"], params["w1"], params["b1"],
                           params["w2"], params["b2"])
    V, E = emb.shape
    assert E == EMBEDDING_DIM
    H = w1.shape[1]
    O = w2.shape[1]
    V_pad = _round_up(V, 8)
    H_pad = _round_up(H, 128)
    O_pad = _round_up(O, 128)

    # Embedding table: zero-pad features 100 -> 128 and vocab rows to x8.
    emb_p = jnp.zeros((V_pad, E_PAD), jnp.float32).at[:V, :E].set(emb)

    # w1 kept 3-D (CONTEXT, E_PAD, H_pad): each 100-row logical context block
    # sits in its own 128-row padded slot (extra rows are zero).
    w1_blocks = w1.reshape(CONTEXT, E, H)
    w1_p = (jnp.zeros((CONTEXT, E_PAD, H_pad), jnp.float32)
            .at[:, :E, :H].set(w1_blocks).astype(jnp.bfloat16))

    b1_p = jnp.zeros((1, H_pad), jnp.float32).at[0, :H].set(b1)
    w2_p = (jnp.zeros((H_pad, O_pad), jnp.float32)
            .at[:H, :O].set(w2).astype(jnp.bfloat16))
    b2_p = jnp.zeros((1, O_pad), jnp.float32).at[0, :O].set(b2)

    return {"emb": emb_p, "w1": w1_p, "b1": b1_p, "w2": w2_p, "b2": b2_p}


def ffnn_forward(x_tokens, kparams, output_dim):
    """x_tokens: (B, CONTEXT) int32 ids. Returns (B, output_dim) f32 logits."""
    emb, w1, b1, w2, b2 = (kparams["emb"], kparams["w1"], kparams["b1"],
                           kparams["w2"], kparams["b2"])
    B = x_tokens.shape[0]
    V_pad = emb.shape[0]
    H_pad = w1.shape[2]
    O_pad = w2.shape[1]

    # Adaptive batch tile: small batches don't over-pad, larger batches
    # amortize per-step overhead (cap keeps the static gather unroll bounded).
    b_tile = min(MAX_B_TILE, _round_up(max(B, 1), 8))
    B_pad = _round_up(B, b_tile)
    num_tiles = B_pad // b_tile

    # Flattened 1-D int32 ids in SMEM (padded rows point at row 0 -> in-bounds).
    ids = (jnp.zeros((B_pad * CONTEXT,), jnp.int32)
           .at[:B * CONTEXT].set(x_tokens.reshape(-1).astype(jnp.int32)))

    flops = 2 * B_pad * (IN_DIM * H_pad + H_pad * O_pad)
    bytes_accessed = (ids.size * 4 + emb.size * 4 + w1.size * 2 + b1.size * 4
                      + w2.size * 2 + b2.size * 4
                      + B_pad * CONTEXT * E_PAD * 4        # gather reads
                      + B_pad * O_pad * 4)                 # output

    out = pl.pallas_call(
        functools.partial(_ffnn_kernel, b_tile=b_tile),
        out_shape=jax.ShapeDtypeStruct((B_pad, O_pad), jnp.float32),
        grid_spec=pltpu.PrefetchScalarGridSpec(
            num_scalar_prefetch=1,                       # token ids -> SMEM
            grid=(num_tiles,),
            in_specs=[
                pl.BlockSpec((V_pad, E_PAD), lambda i, ids: (0, 0)),           # emb
                pl.BlockSpec((CONTEXT, E_PAD, H_pad), lambda i, ids: (0, 0, 0)),  # w1
                pl.BlockSpec((1, H_pad), lambda i, ids: (0, 0)),               # b1
                pl.BlockSpec((H_pad, O_pad), lambda i, ids: (0, 0)),           # w2
                pl.BlockSpec((1, O_pad), lambda i, ids: (0, 0)),               # b2
            ],
            out_specs=pl.BlockSpec((b_tile, O_pad), lambda i, ids: (i, 0)),
            scratch_shapes=[pltpu.VMEM((CONTEXT, b_tile, E_PAD), jnp.float32)],
        ),
        compiler_params=pltpu.CompilerParams(
            dimension_semantics=("parallel",),           # 2x TCs on v7x
        ),
        cost_estimate=pl.CostEstimate(
            flops=flops, bytes_accessed=bytes_accessed, transcendentals=0),
    )(ids, emb, w1, b1, w2, b2)

    return out[:B, :output_dim]


if __name__ == "__main__":
    key = jax.random.PRNGKey(0)
    vocab_size = 50
    hidden_dim = 32
    output_dim = 12
    batch = 8

    k_params, k_tokens = jax.random.split(key)
    params = init_params(k_params, vocab_size, EMBEDDING_DIM, hidden_dim, output_dim)
    x_tokens = jax.random.randint(k_tokens, (batch, CONTEXT), 0, vocab_size, jnp.int32)

    kparams = prepare_params(params)
    logits = ffnn_forward(x_tokens, kparams, output_dim)
    jax.block_until_ready(logits)
    assert logits.shape == (batch, output_dim)

    # Tight check: pure-JAX reference mirroring the kernel numerics
    # (padded dims, bf16 matmul operands, f32 accumulation).
    flat_p = jnp.take(kparams["emb"], x_tokens, axis=0)          # (B, C, E_PAD)
    h_ref = jnp.einsum("bce,ceh->bh", flat_p.astype(jnp.bfloat16), kparams["w1"],
                       preferred_element_type=jnp.float32) + kparams["b1"]
    h_ref = jnp.maximum(h_ref, 0.0)
    ref_p = (jnp.dot(h_ref.astype(jnp.bfloat16), kparams["w2"],
                     preferred_element_type=jnp.float32) + kparams["b2"])[:, :output_dim]
    assert jnp.allclose(logits, ref_p, atol=1e-3, rtol=1e-3)

    # Loose check: full-precision f32 reference of the original module math
    # (bf16 weights introduce small, bounded error).
    flat = jnp.take(params["embedding"], x_tokens, axis=0).reshape(batch, -1)
    ref = (jnp.maximum(flat @ params["w1"] + params["b1"][None, :], 0.0)
           @ params["w2"] + params["b2"][None, :])
    assert jnp.allclose(logits, ref, atol=5e-2, rtol=5e-2)

    print("KERNEL_OK")
</pallas_src>

<mosaic_0001>
module attributes {stable_mosaic.version = 11 : i64} {
  func.func @_ffnn_kernel(%arg0: i32, %arg1: memref<48xi32, #tpu.memory_space<smem>>, %arg2: memref<56x128xf32, #tpu.memory_space<vmem>>, %arg3: memref<6x128x128xbf16, #tpu.memory_space<vmem>>, %arg4: memref<1x128xf32, #tpu.memory_space<vmem>>, %arg5: memref<128x128xbf16, #tpu.memory_space<vmem>>, %arg6: memref<1x128xf32, #tpu.memory_space<vmem>>, %arg7: memref<8x128xf32, #tpu.memory_space<vmem>>, %arg8: memref<6x8x128xf32, #tpu.memory_space<vmem>>) attributes {dimension_semantics = [#tpu.dimension_semantics<parallel>], iteration_bounds = array<i64: 1>, scalar_prefetch = 1 : i64, scratch_operands = 1 : i64, tpu.core_type = #tpu.core_type<tc>, window_params = [{pipeline_mode = #tpu.pipeline_mode<synchronous>, transform_indices = @transform_0, window_bounds = array<i64: 56, 128>}, {pipeline_mode = #tpu.pipeline_mode<synchronous>, transform_indices = @transform_1, window_bounds = array<i64: 6, 128, 128>}, {pipeline_mode = #tpu.pipeline_mode<synchronous>, transform_indices = @transform_2, window_bounds = array<i64: 1, 128>}, {pipeline_mode = #tpu.pipeline_mode<synchronous>, transform_indices = @transform_3, window_bounds = array<i64: 128, 128>}, {pipeline_mode = #tpu.pipeline_mode<synchronous>, transform_indices = @transform_4, window_bounds = array<i64: 1, 128>}, {transform_indices = @transform_5, window_bounds = array<i64: 8, 128>}]} {
    %c48_i32 = arith.constant 48 : i32
    %0 = arith.muli %arg0, %c48_i32 : i32
    %cst = arith.constant 0.000000e+00 : f32
    %1 = vector.broadcast %cst : f32 to vector<8x128xf32>
    %c0_i32 = arith.constant 0 : i32
    %2 = arith.addi %0, %c0_i32 : i32
    %c0_i32_0 = arith.constant 0 : i32
    %3 = arith.addi %2, %c0_i32_0 : i32
    %4 = arith.index_cast %3 : i32 to index
    %5 = memref.load %arg1[%4] : memref<48xi32, #tpu.memory_space<smem>>
    %6 = arith.index_cast %5 : i32 to index
    %c0 = arith.constant 0 : index
    %7 = vector.load %arg2[%6, %c0] : memref<56x128xf32, #tpu.memory_space<vmem>>, vector<1x128xf32>
    %c0_1 = arith.constant 0 : index
    %c0_2 = arith.constant 0 : index
    %c0_3 = arith.constant 0 : index
    %8 = vector.load %arg8[%c0_1, %c0_2, %c0_3] : memref<6x8x128xf32, #tpu.memory_space<vmem>>, vector<1x1x128xf32>
    %9 = vector.shape_cast %8 : vector<1x1x128xf32> to vector<1x128xf32>
    %10 = vector.shape_cast %7 : vector<1x128xf32> to vector<1x1x128xf32>
    tpu.vector_store %arg8[%c0_1, %c0_2, %c0_3], %10 {strides = array<i32>} : memref<6x8x128xf32, #tpu.memory_space<vmem>>, vector<1x1x128xf32>,
    %c6_i32 = arith.constant 6 : i32
    %11 = arith.addi %0, %c6_i32 : i32
    %c0_i32_4 = arith.constant 0 : i32
    %12 = arith.addi %11, %c0_i32_4 : i32
    %13 = arith.index_cast %12 : i32 to index
    %14 = memref.load %arg1[%13] : memref<48xi32, #tpu.memory_space<smem>>
    %15 = arith.index_cast %14 : i32 to index
    %c0_5 = arith.constant 0 : index
    %16 = vector.load %arg2[%15, %c0_5] : memref<56x128xf32, #tpu.memory_space<vmem>>, vector<1x128xf32>
    %c0_6 = arith.constant 0 : index
    %c1 = arith.constant 1 : index
    %c0_7 = arith.constant 0 : index
    %17 = vector.load %arg8[%c0_6, %c1, %c0_7] : memref<6x8x128xf32, #tpu.memory_space<vmem>>, vector<1x1x128xf32>
    %18 = vector.shape_cast %17 : vector<1x1x128xf32> to vector<1x128xf32>
    %19 = vector.shape_cast %16 : vector<1x128xf32> to vector<1x1x128xf32>
    tpu.vector_store %arg8[%c0_6, %c1, %c0_7], %19 {strides = array<i32>} : memref<6x8x128xf32, #tpu.memory_space<vmem>>, vector<1x1x128xf32>,
    %c12_i32 = arith.constant 12 : i32
    %20 = arith.addi %0, %c12_i32 : i32
    %c0_i32_8 = arith.constant 0 : i32
    %21 = arith.addi %20, %c0_i32_8 : i32
    %22 = arith.index_cast %21 : i32 to index
    %23 = memref.load %arg1[%22] : memref<48xi32, #tpu.memory_space<smem>>
    %24 = arith.index_cast %23 : i32 to index
    %c0_9 = arith.constant 0 : index
    %25 = vector.load %arg2[%24, %c0_9] : memref<56x128xf32, #tpu.memory_space<vmem>>, vector<1x128xf32>
    %c0_10 = arith.constant 0 : index
    %c2 = arith.constant 2 : index
    %c0_11 = arith.constant 0 : index
    %26 = vector.load %arg8[%c0_10, %c2, %c0_11] : memref<6x8x128xf32, #tpu.memory_space<vmem>>, vector<1x1x128xf32>
    %27 = vector.shape_cast %26 : vector<1x1x128xf32> to vector<1x128xf32>
    %28 = vector.shape_cast %25 : vector<1x128xf32> to vector<1x1x128xf32>
    tpu.vector_store %arg8[%c0_10, %c2, %c0_11], %28 {strides = array<i32>} : memref<6x8x128xf32, #tpu.memory_space<vmem>>, vector<1x1x128xf32>,
    %c18_i32 = arith.constant 18 : i32
    %29 = arith.addi %0, %c18_i32 : i32
    %c0_i32_12 = arith.constant 0 : i32
    %30 = arith.addi %29, %c0_i32_12 : i32
    %31 = arith.index_cast %30 : i32 to index
    %32 = memref.load %arg1[%31] : memref<48xi32, #tpu.memory_space<smem>>
    %33 = arith.index_cast %32 : i32 to index
    %c0_13 = arith.constant 0 : index
    %34 = vector.load %arg2[%33, %c0_13] : memref<56x128xf32, #tpu.memory_space<vmem>>, vector<1x128xf32>
    %c0_14 = arith.constant 0 : index
    %c3 = arith.constant 3 : index
    %c0_15 = arith.constant 0 : index
    %35 = vector.load %arg8[%c0_14, %c3, %c0_15] : memref<6x8x128xf32, #tpu.memory_space<vmem>>, vector<1x1x128xf32>
    %36 = vector.shape_cast %35 : vector<1x1x128xf32> to vector<1x128xf32>
    %37 = vector.shape_cast %34 : vector<1x128xf32> to vector<1x1x128xf32>
    tpu.vector_store %arg8[%c0_14, %c3, %c0_15], %37 {strides = array<i32>} : memref<6x8x128xf32, #tpu.memory_space<vmem>>, vector<1x1x128xf32>,
    %c24_i32 = arith.constant 24 : i32
    %38 = arith.addi %0, %c24_i32 : i32
    %c0_i32_16 = arith.constant 0 : i32
    %39 = arith.addi %38, %c0_i32_16 : i32
    %40 = arith.index_cast %39 : i32 to index
    %41 = memref.load %arg1[%40] : memref<48xi32, #tpu.memory_space<smem>>
    %42 = arith.index_cast %41 : i32 to index
    %c0_17 = arith.constant 0 : index
    %43 = vector.load %arg2[%42, %c0_17] : memref<56x128xf32, #tpu.memory_space<vmem>>, vector<1x128xf32>
    %c0_18 = arith.constant 0 : index
    %c4 = arith.constant 4 : index
    %c0_19 = arith.constant 0 : index
    %44 = vector.load %arg8[%c0_18, %c4, %c0_19] : memref<6x8x128xf32, #tpu.memory_space<vmem>>, vector<1x1x128xf32>
    %45 = vector.shape_cast %44 : vector<1x1x128xf32> to vector<1x128xf32>
    %46 = vector.shape_cast %43 : vector<1x128xf32> to vector<1x1x128xf32>
    tpu.vector_store %arg8[%c0_18, %c4, %c0_19], %46 {strides = array<i32>} : memref<6x8x128xf32, #tpu.memory_space<vmem>>, vector<1x1x128xf32>,
    %c30_i32 = arith.constant 30 : i32
    %47 = arith.addi %0, %c30_i32 : i32
    %c0_i32_20 = arith.constant 0 : i32
    %48 = arith.addi %47, %c0_i32_20 : i32
    %49 = arith.index_cast %48 : i32 to index
    %50 = memref.load %arg1[%49] : memref<48xi32, #tpu.memory_space<smem>>
    %51 = arith.index_cast %50 : i32 to index
    %c0_21 = arith.constant 0 : index
    %52 = vector.load %arg2[%51, %c0_21] : memref<56x128xf32, #tpu.memory_space<vmem>>, vector<1x128xf32>
    %c0_22 = arith.constant 0 : index
    %c5 = arith.constant 5 : index
    %c0_23 = arith.constant 0 : index
    %53 = vector.load %arg8[%c0_22, %c5, %c0_23] : memref<6x8x128xf32, #tpu.memory_space<vmem>>, vector<1x1x128xf32>
    %54 = vector.shape_cast %53 : vector<1x1x128xf32> to vector<1x128xf32>
    %55 = vector.shape_cast %52 : vector<1x128xf32> to vector<1x1x128xf32>
    tpu.vector_store %arg8[%c0_22, %c5, %c0_23], %55 {strides = array<i32>} : memref<6x8x128xf32, #tpu.memory_space<vmem>>, vector<1x1x128xf32>,
    %c36_i32 = arith.constant 36 : i32
    %56 = arith.addi %0, %c36_i32 : i32
    %c0_i32_24 = arith.constant 0 : i32
    %57 = arith.addi %56, %c0_i32_24 : i32
    %58 = arith.index_cast %57 : i32 to index
    %59 = memref.load %arg1[%58] : memref<48xi32, #tpu.memory_space<smem>>
    %60 = arith.index_cast %59 : i32 to index
    %c0_25 = arith.constant 0 : index
    %61 = vector.load %arg2[%60, %c0_25] : memref<56x128xf32, #tpu.memory_space<vmem>>, vector<1x128xf32>
    %c0_26 = arith.constant 0 : index
    %c6 = arith.constant 6 : index
    %c0_27 = arith.constant 0 : index
    %62 = vector.load %arg8[%c0_26, %c6, %c0_27] : memref<6x8x128xf32, #tpu.memory_space<vmem>>, vector<1x1x128xf32>
    %63 = vector.shape_cast %62 : vector<1x1x128xf32> to vector<1x128xf32>
    %64 = vector.shape_cast %61 : vector<1x128xf32> to vector<1x1x128xf32>
    tpu.vector_store %arg8[%c0_26, %c6, %c0_27], %64 {strides = array<i32>} : memref<6x8x128xf32, #tpu.memory_space<vmem>>, vector<1x1x128xf32>,
    %c42_i32 = arith.constant 42 : i32
    %65 = arith.addi %0, %c42_i32 : i32
    %c0_i32_28 = arith.constant 0 : i32
    %66 = arith.addi %65, %c0_i32_28 : i32
    %67 = arith.index_cast %66 : i32 to index
    %68 = memref.load %arg1[%67] : memref<48xi32, #tpu.memory_space<smem>>
    %69 = arith.index_cast %68 : i32 to index
    %c0_29 = arith.constant 0 : index
    %70 = vector.load %arg2[%69, %c0_29] : memref<56x128xf32, #tpu.memory_space<vmem>>, vector<1x128xf32>
    %c0_30 = arith.constant 0 : index
    %c7 = arith.constant 7 : index
    %c0_31 = arith.constant 0 : index
    %71 = vector.load %arg8[%c0_30, %c7, %c0_31] : memref<6x8x128xf32, #tpu.memory_space<vmem>>, vector<1x1x128xf32>
    %72 = vector.shape_cast %71 : vector<1x1x128xf32> to vector<1x128xf32>
    %73 = vector.shape_cast %70 : vector<1x128xf32> to vector<1x1x128xf32>
    tpu.vector_store %arg8[%c0_30, %c7, %c0_31], %73 {strides = array<i32>} : memref<6x8x128xf32, #tpu.memory_space<vmem>>, vector<1x1x128xf32>,
    %c0_32 = arith.constant 0 : index
    %c0_33 = arith.constant 0 : index
    %c0_34 = arith.constant 0 : index
    %74 = vector.load %arg8[%c0_32, %c0_33, %c0_34] : memref<6x8x128xf32, #tpu.memory_space<vmem>>, vector<1x8x128xf32>
    %75 = vector.shape_cast %74 : vector<1x8x128xf32> to vector<8x128xf32>
    %76 = arith.truncf %75 : vector<8x128xf32> to vector<8x128xbf16>
    %c0_35 = arith.constant 0 : index
    %c0_36 = arith.constant 0 : index
    %c0_37 = arith.constant 0 : index
    %77 = vector.load %arg3[%c0_35, %c0_36, %c0_37] : memref<6x128x128xbf16, #tpu.memory_space<vmem>>, vector<1x128x128xbf16>
    %78 = vector.shape_cast %77 : vector<1x128x128xbf16> to vector<128x128xbf16>
    %cst_38 = arith.constant dense<0.000000e+00> : vector<8x128xf32>
    %79 = tpu.matmul %76, %78, %cst_38 {dimension_numbers = #tpu.dot_dimension_numbers<[1], [0], [0], [1], [0, 0, 1, 1], [], []>} : vector<8x128xbf16>, vector<128x128xbf16>, vector<8x128xf32> -> vector<8x128xf32>
    %80 = arith.addf %1, %79 : vector<8x128xf32>
    %c0_i32_39 = arith.constant 0 : i32
    %81 = arith.addi %0, %c0_i32_39 : i32
    %c1_i32 = arith.constant 1 : i32
    %82 = arith.addi %81, %c1_i32 : i32
    %83 = arith.index_cast %82 : i32 to index
    %84 = memref.load %arg1[%83] : memref<48xi32, #tpu.memory_space<smem>>
    %85 = arith.index_cast %84 : i32 to index
    %c0_40 = arith.constant 0 : index
    %86 = vector.load %arg2[%85, %c0_40] : memref<56x128xf32, #tpu.memory_space<vmem>>, vector<1x128xf32>
    %c1_41 = arith.constant 1 : index
    %c0_42 = arith.constant 0 : index
    %c0_43 = arith.constant 0 : index
    %87 = vector.load %arg8[%c1_41, %c0_42, %c0_43] : memref<6x8x128xf32, #tpu.memory_space<vmem>>, vector<1x1x128xf32>
    %88 = vector.shape_cast %87 : vector<1x1x128xf32> to vector<1x128xf32>
    %89 = vector.shape_cast %86 : vector<1x128xf32> to vector<1x1x128xf32>
    tpu.vector_store %arg8[%c1_41, %c0_42, %c0_43], %89 {strides = array<i32>} : memref<6x8x128xf32, #tpu.memory_space<vmem>>, vector<1x1x128xf32>,
    %c6_i32_44 = arith.constant 6 : i32
    %90 = arith.addi %0, %c6_i32_44 : i32
    %c1_i32_45 = arith.constant 1 : i32
    %91 = arith.addi %90, %c1_i32_45 : i32
    %92 = arith.index_cast %91 : i32 to index
    %93 = memref.load %arg1[%92] : memref<48xi32, #tpu.memory_space<smem>>
    %94 = arith.index_cast %93 : i32 to index
    %c0_46 = arith.constant 0 : index
    %95 = vector.load %arg2[%94, %c0_46] : memref<56x128xf32, #tpu.memory_space<vmem>>, vector<1x128xf32>
    %c1_47 = arith.constant 1 : index
    %c1_48 = arith.constant 1 : index
    %c0_49 = arith.constant 0 : index
    %96 = vector.load %arg8[%c1_47, %c1_48, %c0_49] : memref<6x8x128xf32, #tpu.memory_space<vmem>>, vector<1x1x128xf32>
    %97 = vector.shape_cast %96 : vector<1x1x128xf32> to vector<1x128xf32>
    %98 = vector.shape_cast %95 : vector<1x128xf32> to vector<1x1x128xf32>
    tpu.vector_store %arg8[%c1_47, %c1_48, %c0_49], %98 {strides = array<i32>} : memref<6x8x128xf32, #tpu.memory_space<vmem>>, vector<1x1x128xf32>,
    %c12_i32_50 = arith.constant 12 : i32
    %99 = arith.addi %0, %c12_i32_50 : i32
    %c1_i32_51 = arith.constant 1 : i32
    %100 = arith.addi %99, %c1_i32_51 : i32
    %101 = arith.index_cast %100 : i32 to index
    %102 = memref.load %arg1[%101] : memref<48xi32, #tpu.memory_space<smem>>
    %103 = arith.index_cast %102 : i32 to index
    %c0_52 = arith.constant 0 : index
    %104 = vector.load %arg2[%103, %c0_52] : memref<56x128xf32, #tpu.memory_space<vmem>>, vector<1x128xf32>
    %c1_53 = arith.constant 1 : index
    %c2_54 = arith.constant 2 : index
    %c0_55 = arith.constant 0 : index
    %105 = vector.load %arg8[%c1_53, %c2_54, %c0_55] : memref<6x8x128xf32, #tpu.memory_space<vmem>>, vector<1x1x128xf32>
    %106 = vector.shape_cast %105 : vector<1x1x128xf32> to vector<1x128xf32>
    %107 = vector.shape_cast %104 : vector<1x128xf32> to vector<1x1x128xf32>
    tpu.vector_store %arg8[%c1_53, %c2_54, %c0_55], %107 {strides = array<i32>} : memref<6x8x128xf32, #tpu.memory_space<vmem>>, vector<1x1x128xf32>,
    %c18_i32_56 = arith.constant 18 : i32
    %108 = arith.addi %0, %c18_i32_56 : i32
    %c1_i32_57 = arith.constant 1 : i32
    %109 = arith.addi %108, %c1_i32_57 : i32
    %110 = arith.index_cast %109 : i32 to index
    %111 = memref.load %arg1[%110] : memref<48xi32, #tpu.memory_space<smem>>
    %112 = arith.index_cast %111 : i32 to index
    %c0_58 = arith.constant 0 : index
    %113 = vector.load %arg2[%112, %c0_58] : memref<56x128xf32, #tpu.memory_space<vmem>>, vector<1x128xf32>
    %c1_59 = arith.constant 1 : index
    %c3_60 = arith.constant 3 : index
    %c0_61 = arith.constant 0 : index
    %114 = vector.load %arg8[%c1_59, %c3_60, %c0_61] : memref<6x8x128xf32, #tpu.memory_space<vmem>>, vector<1x1x128xf32>
    %115 = vector.shape_cast %114 : vector<1x1x128xf32> to vector<1x128xf32>
    %116 = vector.shape_cast %113 : vector<1x128xf32> to vector<1x1x128xf32>
    tpu.vector_store %arg8[%c1_59, %c3_60, %c0_61], %116 {strides = array<i32>} : memref<6x8x128xf32, #tpu.memory_space<vmem>>, vector<1x1x128xf32>,
    %c24_i32_62 = arith.constant 24 : i32
    %117 = arith.addi %0, %c24_i32_62 : i32
    %c1_i32_63 = arith.constant 1 : i32
    %118 = arith.addi %117, %c1_i32_63 : i32
    %119 = arith.index_cast %118 : i32 to index
    %120 = memref.load %arg1[%119] : memref<48xi32, #tpu.memory_space<smem>>
    %121 = arith.index_cast %120 : i32 to index
    %c0_64 = arith.constant 0 : index
    %122 = vector.load %arg2[%121, %c0_64] : memref<56x128xf32, #tpu.memory_space<vmem>>, vector<1x128xf32>
    %c1_65 = arith.constant 1 : index
    %c4_66 = arith.constant 4 : index
    %c0_67 = arith.constant 0 : index
    %123 = vector.load %arg8[%c1_65, %c4_66, %c0_67] : memref<6x8x128xf32, #tpu.memory_space<vmem>>, vector<1x1x128xf32>
    %124 = vector.shape_cast %123 : vector<1x1x128xf32> to vector<1x128xf32>
    %125 = vector.shape_cast %122 : vector<1x128xf32> to vector<1x1x128xf32>
    tpu.vector_store %arg8[%c1_65, %c4_66, %c0_67], %125 {strides = array<i32>} : memref<6x8x128xf32, #tpu.memory_space<vmem>>, vector<1x1x128xf32>,
    %c30_i32_68 = arith.constant 30 : i32
    %126 = arith.addi %0, %c30_i32_68 : i32
    %c1_i32_69 = arith.constant 1 : i32
    %127 = arith.addi %126, %c1_i32_69 : i32
    %128 = arith.index_cast %127 : i32 to index
    %129 = memref.load %arg1[%128] : memref<48xi32, #tpu.memory_space<smem>>
    %130 = arith.index_cast %129 : i32 to index
    %c0_70 = arith.constant 0 : index
    %131 = vector.load %arg2[%130, %c0_70] : memref<56x128xf32, #tpu.memory_space<vmem>>, vector<1x128xf32>
    %c1_71 = arith.constant 1 : index
    %c5_72 = arith.constant 5 : index
    %c0_73 = arith.constant 0 : index
    %132 = vector.load %arg8[%c1_71, %c5_72, %c0_73] : memref<6x8x128xf32, #tpu.memory_space<vmem>>, vector<1x1x128xf32>
    %133 = vector.shape_cast %132 : vector<1x1x128xf32> to vector<1x128xf32>
    %134 = vector.shape_cast %131 : vector<1x128xf32> to vector<1x1x128xf32>
    tpu.vector_store %arg8[%c1_71, %c5_72, %c0_73], %134 {strides = array<i32>} : memref<6x8x128xf32, #tpu.memory_space<vmem>>, vector<1x1x128xf32>,
    %c36_i32_74 = arith.constant 36 : i32
    %135 = arith.addi %0, %c36_i32_74 : i32
    %c1_i32_75 = arith.constant 1 : i32
    %136 = arith.addi %135, %c1_i32_75 : i32
    %137 = arith.index_cast %136 : i32 to index
    %138 = memref.load %arg1[%137] : memref<48xi32, #tpu.memory_space<smem>>
    %139 = arith.index_cast %138 : i32 to index
    %c0_76 = arith.constant 0 : index
    %140 = vector.load %arg2[%139, %c0_76] : memref<56x128xf32, #tpu.memory_space<vmem>>, vector<1x128xf32>
    %c1_77 = arith.constant 1 : index
    %c6_78 = arith.constant 6 : index
    %c0_79 = arith.constant 0 : index
    %141 = vector.load %arg8[%c1_77, %c6_78, %c0_79] : memref<6x8x128xf32, #tpu.memory_space<vmem>>, vector<1x1x128xf32>
    %142 = vector.shape_cast %141 : vector<1x1x128xf32> to vector<1x128xf32>
    %143 = vector.shape_cast %140 : vector<1x128xf32> to vector<1x1x128xf32>
    tpu.vector_store %arg8[%c1_77, %c6_78, %c0_79], %143 {strides = array<i32>} : memref<6x8x128xf32, #tpu.memory_space<vmem>>, vector<1x1x128xf32>,
    %c42_i32_80 = arith.constant 42 : i32
    %144 = arith.addi %0, %c42_i32_80 : i32
    %c1_i32_81 = arith.constant 1 : i32
    %145 = arith.addi %144, %c1_i32_81 : i32
    %146 = arith.index_cast %145 : i32 to index
    %147 = memref.load %arg1[%146] : memref<48xi32, #tpu.memory_space<smem>>
    %148 = arith.index_cast %147 : i32 to index
    %c0_82 = arith.constant 0 : index
    %149 = vector.load %arg2[%148, %c0_82] : memref<56x128xf32, #tpu.memory_space<vmem>>, vector<1x128xf32>
    %c1_83 = arith.constant 1 : index
    %c7_84 = arith.constant 7 : index
    %c0_85 = arith.constant 0 : index
    %150 = vector.load %arg8[%c1_83, %c7_84, %c0_85] : memref<6x8x128xf32, #tpu.memory_space<vmem>>, vector<1x1x128xf32>
    %151 = vector.shape_cast %150 : vector<1x1x128xf32> to vector<1x128xf32>
    %152 = vector.shape_cast %149 : vector<1x128xf32> to vector<1x1x128xf32>
    tpu.vector_store %arg8[%c1_83, %c7_84, %c0_85], %152 {strides = array<i32>} : memref<6x8x128xf32, #tpu.memory_space<vmem>>, vector<1x1x128xf32>,
    %c1_86 = arith.constant 1 : index
    %c0_87 = arith.constant 0 : index
    %c0_88 = arith.constant 0 : index
    %153 = vector.load %arg8[%c1_86, %c0_87, %c0_88] : memref<6x8x128xf32, #tpu.memory_space<vmem>>, vector<1x8x128xf32>
    %154 = vector.shape_cast %153 : vector<1x8x128xf32> to vector<8x128xf32>
    %155 = arith.truncf %154 : vector<8x128xf32> to vector<8x128xbf16>
    %c1_89 = arith.constant 1 : index
    %c0_90 = arith.constant 0 : index
    %c0_91 = arith.constant 0 : index
    %156 = vector.load %arg3[%c1_89, %c0_90, %c0_91] : memref<6x128x128xbf16, #tpu.memory_space<vmem>>, vector<1x128x128xbf16>
    %157 = vector.shape_cast %156 : vector<1x128x128xbf16> to vector<128x128xbf16>
    %cst_92 = arith.constant dense<0.000000e+00> : vector<8x128xf32>
    %158 = tpu.matmul %155, %157, %cst_92 {dimension_numbers = #tpu.dot_dimension_numbers<[1], [0], [0], [1], [0, 0, 1, 1], [], []>} : vector<8x128xbf16>, vector<128x128xbf16>, vector<8x128xf32> -> vector<8x128xf32>
    %159 = arith.addf %80, %158 : vector<8x128xf32>
    %c0_i32_93 = arith.constant 0 : i32
    %160 = arith.addi %0, %c0_i32_93 : i32
    %c2_i32 = arith.constant 2 : i32
    %161 = arith.addi %160, %c2_i32 : i32
    %162 = arith.index_cast %161 : i32 to index
    %163 = memref.load %arg1[%162] : memref<48xi32, #tpu.memory_space<smem>>
    %164 = arith.index_cast %163 : i32 to index
    %c0_94 = arith.constant 0 : index
    %165 = vector.load %arg2[%164, %c0_94] : memref<56x128xf32, #tpu.memory_space<vmem>>, vector<1x128xf32>
    %c2_95 = arith.constant 2 : index
    %c0_96 = arith.constant 0 : index
    %c0_97 = arith.constant 0 : index
    %166 = vector.load %arg8[%c2_95, %c0_96, %c0_97] : memref<6x8x128xf32, #tpu.memory_space<vmem>>, vector<1x1x128xf32>
    %167 = vector.shape_cast %166 : vector<1x1x128xf32> to vector<1x128xf32>
    %168 = vector.shape_cast %165 : vector<1x128xf32> to vector<1x1x128xf32>
    tpu.vector_store %arg8[%c2_95, %c0_96, %c0_97], %168 {strides = array<i32>} : memref<6x8x128xf32, #tpu.memory_space<vmem>>, vector<1x1x128xf32>,
    %c6_i32_98 = arith.constant 6 : i32
    %169 = arith.addi %0, %c6_i32_98 : i32
    %c2_i32_99 = arith.constant 2 : i32
    %170 = arith.addi %169, %c2_i32_99 : i32
    %171 = arith.index_cast %170 : i32 to index
    %172 = memref.load %arg1[%171] : memref<48xi32, #tpu.memory_space<smem>>
    %173 = arith.index_cast %172 : i32 to index
    %c0_100 = arith.constant 0 : index
    %174 = vector.load %arg2[%173, %c0_100] : memref<56x128xf32, #tpu.memory_space<vmem>>, vector<1x128xf32>
    %c2_101 = arith.constant 2 : index
    %c1_102 = arith.constant 1 : index
    %c0_103 = arith.constant 0 : index
    %175 = vector.load %arg8[%c2_101, %c1_102, %c0_103] : memref<6x8x128xf32, #tpu.memory_space<vmem>>, vector<1x1x128xf32>
    %176 = vector.shape_cast %175 : vector<1x1x128xf32> to vector<1x128xf32>
    %177 = vector.shape_cast %174 : vector<1x128xf32> to vector<1x1x128xf32>
    tpu.vector_store %arg8[%c2_101, %c1_102, %c0_103], %177 {strides = array<i32>} : memref<6x8x128xf32, #tpu.memory_space<vmem>>, vector<1x1x128xf32>,
    %c12_i32_104 = arith.constant 12 : i32
    %178 = arith.addi %0, %c12_i32_104 : i32
    %c2_i32_105 = arith.constant 2 : i32
    %179 = arith.addi %178, %c2_i32_105 : i32
    %180 = arith.index_cast %179 : i32 to index
    %181 = memref.load %arg1[%180] : memref<48xi32, #tpu.memory_space<smem>>
    %182 = arith.index_cast %181 : i32 to index
    %c0_106 = arith.constant 0 : index
    %183 = vector.load %arg2[%182, %c0_106] : memref<56x128xf32, #tpu.memory_space<vmem>>, vector<1x128xf32>
    %c2_107 = arith.constant 2 : index
    %c2_108 = arith.constant 2 : index
    %c0_109 = arith.constant 0 : index
    %184 = vector.load %arg8[%c2_107, %c2_108, %c0_109] : memref<6x8x128xf32, #tpu.memory_space<vmem>>, vector<1x1x128xf32>
    %185 = vector.shape_cast %184 : vector<1x1x128xf32> to vector<1x128xf32>
    %186 = vector.shape_cast %183 : vector<1x128xf32> to vector<1x1x128xf32>
    tpu.vector_store %arg8[%c2_107, %c2_108, %c0_109], %186 {strides = array<i32>} : memref<6x8x128xf32, #tpu.memory_space<vmem>>, vector<1x1x128xf32>,
    %c18_i32_110 = arith.constant 18 : i32
    %187 = arith.addi %0, %c18_i32_110 : i32
    %c2_i32_111 = arith.constant 2 : i32
    %188 = arith.addi %187, %c2_i32_111 : i32
    %189 = arith.index_cast %188 : i32 to index
    %190 = memref.load %arg1[%189] : memref<48xi32, #tpu.memory_space<smem>>
    %191 = arith.index_cast %190 : i32 to index
    %c0_112 = arith.constant 0 : index
    %192 = vector.load %arg2[%191, %c0_112] : memref<56x128xf32, #tpu.memory_space<vmem>>, vector<1x128xf32>
    %c2_113 = arith.constant 2 : index
    %c3_114 = arith.constant 3 : index
    %c0_115 = arith.constant 0 : index
    %193 = vector.load %arg8[%c2_113, %c3_114, %c0_115] : memref<6x8x128xf32, #tpu.memory_space<vmem>>, vector<1x1x128xf32>
    %194 = vector.shape_cast %193 : vector<1x1x128xf32> to vector<1x128xf32>
    %195 = vector.shape_cast %192 : vector<1x128xf32> to vector<1x1x128xf32>
    tpu.vector_store %arg8[%c2_113, %c3_114, %c0_115], %195 {strides = array<i32>} : memref<6x8x128xf32, #tpu.memory_space<vmem>>, vector<1x1x128xf32>,
    %c24_i32_116 = arith.constant 24 : i32
    %196 = arith.addi %0, %c24_i32_116 : i32
    %c2_i32_117 = arith.constant 2 : i32
    %197 = arith.addi %196, %c2_i32_117 : i32
    %198 = arith.index_cast %197 : i32 to index
    %199 = memref.load %arg1[%198] : memref<48xi32, #tpu.memory_space<smem>>
    %200 = arith.index_cast %199 : i32 to index
    %c0_118 = arith.constant 0 : index
    %201 = vector.load %arg2[%200, %c0_118] : memref<56x128xf32, #tpu.memory_space<vmem>>, vector<1x128xf32>
    %c2_119 = arith.constant 2 : index
    %c4_120 = arith.constant 4 : index
    %c0_121 = arith.constant 0 : index
    %202 = vector.load %arg8[%c2_119, %c4_120, %c0_121] : memref<6x8x128xf32, #tpu.memory_space<vmem>>, vector<1x1x128xf32>
    %203 = vector.shape_cast %202 : vector<1x1x128xf32> to vector<1x128xf32>
    %204 = vector.shape_cast %201 : vector<1x128xf32> to vector<1x1x128xf32>
    tpu.vector_store %arg8[%c2_119, %c4_120, %c0_121], %204 {strides = array<i32>} : memref<6x8x128xf32, #tpu.memory_space<vmem>>, vector<1x1x128xf32>,
    %c30_i32_122 = arith.constant 30 : i32
    %205 = arith.addi %0, %c30_i32_122 : i32
    %c2_i32_123 = arith.constant 2 : i32
    %206 = arith.addi %205, %c2_i32_123 : i32
    %207 = arith.index_cast %206 : i32 to index
    %208 = memref.load %arg1[%207] : memref<48xi32, #tpu.memory_space<smem>>
    %209 = arith.index_cast %208 : i32 to index
    %c0_124 = arith.constant 0 : index
    %210 = vector.load %arg2[%209, %c0_124] : memref<56x128xf32, #tpu.memory_space<vmem>>, vector<1x128xf32>
    %c2_125 = arith.constant 2 : index
    %c5_126 = arith.constant 5 : index
    %c0_127 = arith.constant 0 : index
    %211 = vector.load %arg8[%c2_125, %c5_126, %c0_127] : memref<6x8x128xf32, #tpu.memory_space<vmem>>, vector<1x1x128xf32>
    %212 = vector.shape_cast %211 : vector<1x1x128xf32> to vector<1x128xf32>
    %213 = vector.shape_cast %210 : vector<1x128xf32> to vector<1x1x128xf32>
    tpu.vector_store %arg8[%c2_125, %c5_126, %c0_127], %213 {strides = array<i32>} : memref<6x8x128xf32, #tpu.memory_space<vmem>>, vector<1x1x128xf32>,
    %c36_i32_128 = arith.constant 36 : i32
    %214 = arith.addi %0, %c36_i32_128 : i32
    %c2_i32_129 = arith.constant 2 : i32
    %215 = arith.addi %214, %c2_i32_129 : i32
    %216 = arith.index_cast %215 : i32 to index
    %217 = memref.load %arg1[%216] : memref<48xi32, #tpu.memory_space<smem>>
    %218 = arith.index_cast %217 : i32 to index
    %c0_130 = arith.constant 0 : index
    %219 = vector.load %arg2[%218, %c0_130] : memref<56x128xf32, #tpu.memory_space<vmem>>, vector<1x128xf32>
    %c2_131 = arith.constant 2 : index
    %c6_132 = arith.constant 6 : index
    %c0_133 = arith.constant 0 : index
    %220 = vector.load %arg8[%c2_131, %c6_132, %c0_133] : memref<6x8x128xf32, #tpu.memory_space<vmem>>, vector<1x1x128xf32>
    %221 = vector.shape_cast %220 : vector<1x1x128xf32> to vector<1x128xf32>
    %222 = vector.shape_cast %219 : vector<1x128xf32> to vector<1x1x128xf32>
    tpu.vector_store %arg8[%c2_131, %c6_132, %c0_133], %222 {strides = array<i32>} : memref<6x8x128xf32, #tpu.memory_space<vmem>>, vector<1x1x128xf32>,
    %c42_i32_134 = arith.constant 42 : i32
    %223 = arith.addi %0, %c42_i32_134 : i32
    %c2_i32_135 = arith.constant 2 : i32
    %224 = arith.addi %223, %c2_i32_135 : i32
    %225 = arith.index_cast %224 : i32 to index
    %226 = memref.load %arg1[%225] : memref<48xi32, #tpu.memory_space<smem>>
    %227 = arith.index_cast %226 : i32 to index
    %c0_136 = arith.constant 0 : index
    %228 = vector.load %arg2[%227, %c0_136] : memref<56x128xf32, #tpu.memory_space<vmem>>, vector<1x128xf32>
    %c2_137 = arith.constant 2 : index
    %c7_138 = arith.constant 7 : index
    %c0_139 = arith.constant 0 : index
    %229 = vector.load %arg8[%c2_137, %c7_138, %c0_139] : memref<6x8x128xf32, #tpu.memory_space<vmem>>, vector<1x1x128xf32>
    %230 = vector.shape_cast %229 : vector<1x1x128xf32> to vector<1x128xf32>
    %231 = vector.shape_cast %228 : vector<1x128xf32> to vector<1x1x128xf32>
    tpu.vector_store %arg8[%c2_137, %c7_138, %c0_139], %231 {strides = array<i32>} : memref<6x8x128xf32, #tpu.memory_space<vmem>>, vector<1x1x128xf32>,
    %c2_140 = arith.constant 2 : index
    %c0_141 = arith.constant 0 : index
    %c0_142 = arith.constant 0 : index
    %232 = vector.load %arg8[%c2_140, %c0_141, %c0_142] : memref<6x8x128xf32, #tpu.memory_space<vmem>>, vector<1x8x128xf32>
    %233 = vector.shape_cast %232 : vector<1x8x128xf32> to vector<8x128xf32>
    %234 = arith.truncf %233 : vector<8x128xf32> to vector<8x128xbf16>
    %c2_143 = arith.constant 2 : index
    %c0_144 = arith.constant 0 : index
    %c0_145 = arith.constant 0 : index
    %235 = vector.load %arg3[%c2_143, %c0_144, %c0_145] : memref<6x128x128xbf16, #tpu.memory_space<vmem>>, vector<1x128x128xbf16>
    %236 = vector.shape_cast %235 : vector<1x128x128xbf16> to vector<128x128xbf16>
    %cst_146 = arith.constant dense<0.000000e+00> : vector<8x128xf32>
    %237 = tpu.matmul %234, %236, %cst_146 {dimension_numbers = #tpu.dot_dimension_numbers<[1], [0], [0], [1], [0, 0, 1, 1], [], []>} : vector<8x128xbf16>, vector<128x128xbf16>, vector<8x128xf32> -> vector<8x128xf32>
    %238 = arith.addf %159, %237 : vector<8x128xf32>
    %c0_i32_147 = arith.constant 0 : i32
    %239 = arith.addi %0, %c0_i32_147 : i32
    %c3_i32 = arith.constant 3 : i32
    %240 = arith.addi %239, %c3_i32 : i32
    %241 = arith.index_cast %240 : i32 to index
    %242 = memref.load %arg1[%241] : memref<48xi32, #tpu.memory_space<smem>>
    %243 = arith.index_cast %242 : i32 to index
    %c0_148 = arith.constant 0 : index
    %244 = vector.load %arg2[%243, %c0_148] : memref<56x128xf32, #tpu.memory_space<vmem>>, vector<1x128xf32>
    %c3_149 = arith.constant 3 : index
    %c0_150 = arith.constant 0 : index
    %c0_151 = arith.constant 0 : index
    %245 = vector.load %arg8[%c3_149, %c0_150, %c0_151] : memref<6x8x128xf32, #tpu.memory_space<vmem>>, vector<1x1x128xf32>
    %246 = vector.shape_cast %245 : vector<1x1x128xf32> to vector<1x128xf32>
    %247 = vector.shape_cast %244 : vector<1x128xf32> to vector<1x1x128xf32>
    tpu.vector_store %arg8[%c3_149, %c0_150, %c0_151], %247 {strides = array<i32>} : memref<6x8x128xf32, #tpu.memory_space<vmem>>, vector<1x1x128xf32>,
    %c6_i32_152 = arith.constant 6 : i32
    %248 = arith.addi %0, %c6_i32_152 : i32
    %c3_i32_153 = arith.constant 3 : i32
    %249 = arith.addi %248, %c3_i32_153 : i32
    %250 = arith.index_cast %249 : i32 to index
    %251 = memref.load %arg1[%250] : memref<48xi32, #tpu.memory_space<smem>>
    %252 = arith.index_cast %251 : i32 to index
    %c0_154 = arith.constant 0 : index
    %253 = vector.load %arg2[%252, %c0_154] : memref<56x128xf32, #tpu.memory_space<vmem>>, vector<1x128xf32>
    %c3_155 = arith.constant 3 : index
    %c1_156 = arith.constant 1 : index
    %c0_157 = arith.constant 0 : index
    %254 = vector.load %arg8[%c3_155, %c1_156, %c0_157] : memref<6x8x128xf32, #tpu.memory_space<vmem>>, vector<1x1x128xf32>
    %255 = vector.shape_cast %254 : vector<1x1x128xf32> to vector<1x128xf32>
    %256 = vector.shape_cast %253 : vector<1x128xf32> to vector<1x1x128xf32>
    tpu.vector_store %arg8[%c3_155, %c1_156, %c0_157], %256 {strides = array<i32>} : memref<6x8x128xf32, #tpu.memory_space<vmem>>, vector<1x1x128xf32>,
    %c12_i32_158 = arith.constant 12 : i32
    %257 = arith.addi %0, %c12_i32_158 : i32
    %c3_i32_159 = arith.constant 3 : i32
    %258 = arith.addi %257, %c3_i32_159 : i32
    %259 = arith.index_cast %258 : i32 to index
    %260 = memref.load %arg1[%259] : memref<48xi32, #tpu.memory_space<smem>>
    %261 = arith.index_cast %260 : i32 to index
    %c0_160 = arith.constant 0 : index
    %262 = vector.load %arg2[%261, %c0_160] : memref<56x128xf32, #tpu.memory_space<vmem>>, vector<1x128xf32>
    %c3_161 = arith.constant 3 : index
    %c2_162 = arith.constant 2 : index
    %c0_163 = arith.constant 0 : index
    %263 = vector.load %arg8[%c3_161, %c2_162, %c0_163] : memref<6x8x128xf32, #tpu.memory_space<vmem>>, vector<1x1x128xf32>
    %264 = vector.shape_cast %263 : vector<1x1x128xf32> to vector<1x128xf32>
    %265 = vector.shape_cast %262 : vector<1x128xf32> to vector<1x1x128xf32>
    tpu.vector_store %arg8[%c3_161, %c2_162, %c0_163], %265 {strides = array<i32>} : memref<6x8x128xf32, #tpu.memory_space<vmem>>, vector<1x1x128xf32>,
    %c18_i32_164 = arith.constant 18 : i32
    %266 = arith.addi %0, %c18_i32_164 : i32
    %c3_i32_165 = arith.constant 3 : i32
    %267 = arith.addi %266, %c3_i32_165 : i32
    %268 = arith.index_cast %267 : i32 to index
    %269 = memref.load %arg1[%268] : memref<48xi32, #tpu.memory_space<smem>>
    %270 = arith.index_cast %269 : i32 to index
    %c0_166 = arith.constant 0 : index
    %271 = vector.load %arg2[%270, %c0_166] : memref<56x128xf32, #tpu.memory_space<vmem>>, vector<1x128xf32>
    %c3_167 = arith.constant 3 : index
    %c3_168 = arith.constant 3 : index
    %c0_169 = arith.constant 0 : index
    %272 = vector.load %arg8[%c3_167, %c3_168, %c0_169] : memref<6x8x128xf32, #tpu.memory_space<vmem>>, vector<1x1x128xf32>
    %273 = vector.shape_cast %272 : vector<1x1x128xf32> to vector<1x128xf32>
    %274 = vector.shape_cast %271 : vector<1x128xf32> to vector<1x1x128xf32>
    tpu.vector_store %arg8[%c3_167, %c3_168, %c0_169], %274 {strides = array<i32>} : memref<6x8x128xf32, #tpu.memory_space<vmem>>, vector<1x1x128xf32>,
    %c24_i32_170 = arith.constant 24 : i32
    %275 = arith.addi %0, %c24_i32_170 : i32
    %c3_i32_171 = arith.constant 3 : i32
    %276 = arith.addi %275, %c3_i32_171 : i32
    %277 = arith.index_cast %276 : i32 to index
    %278 = memref.load %arg1[%277] : memref<48xi32, #tpu.memory_space<smem>>
    %279 = arith.index_cast %278 : i32 to index
    %c0_172 = arith.constant 0 : index
    %280 = vector.load %arg2[%279, %c0_172] : memref<56x128xf32, #tpu.memory_space<vmem>>, vector<1x128xf32>
    %c3_173 = arith.constant 3 : index
    %c4_174 = arith.constant 4 : index
    %c0_175 = arith.constant 0 : index
    %281 = vector.load %arg8[%c3_173, %c4_174, %c0_175] : memref<6x8x128xf32, #tpu.memory_space<vmem>>, vector<1x1x128xf32>
    %282 = vector.shape_cast %281 : vector<1x1x128xf32> to vector<1x128xf32>
    %283 = vector.shape_cast %280 : vector<1x128xf32> to vector<1x1x128xf32>
    tpu.vector_store %arg8[%c3_173, %c4_174, %c0_175], %283 {strides = array<i32>} : memref<6x8x128xf32, #tpu.memory_space<vmem>>, vector<1x1x128xf32>,
    %c30_i32_176 = arith.constant 30 : i32
    %284 = arith.addi %0, %c30_i32_176 : i32
    %c3_i32_177 = arith.constant 3 : i32
    %285 = arith.addi %284, %c3_i32_177 : i32
    %286 = arith.index_cast %285 : i32 to index
    %287 = memref.load %arg1[%286] : memref<48xi32, #tpu.memory_space<smem>>
    %288 = arith.index_cast %287 : i32 to index
    %c0_178 = arith.constant 0 : index
    %289 = vector.load %arg2[%288, %c0_178] : memref<56x128xf32, #tpu.memory_space<vmem>>, vector<1x128xf32>
    %c3_179 = arith.constant 3 : index
    %c5_180 = arith.constant 5 : index
    %c0_181 = arith.constant 0 : index
    %290 = vector.load %arg8[%c3_179, %c5_180, %c0_181] : memref<6x8x128xf32, #tpu.memory_space<vmem>>, vector<1x1x128xf32>
    %291 = vector.shape_cast %290 : vector<1x1x128xf32> to vector<1x128xf32>
    %292 = vector.shape_cast %289 : vector<1x128xf32> to vector<1x1x128xf32>
    tpu.vector_store %arg8[%c3_179, %c5_180, %c0_181], %292 {strides = array<i32>} : memref<6x8x128xf32, #tpu.memory_space<vmem>>, vector<1x1x128xf32>,
    %c36_i32_182 = arith.constant 36 : i32
    %293 = arith.addi %0, %c36_i32_182 : i32
    %c3_i32_183 = arith.constant 3 : i32
    %294 = arith.addi %293, %c3_i32_183 : i32
    %295 = arith.index_cast %294 : i32 to index
    %296 = memref.load %arg1[%295] : memref<48xi32, #tpu.memory_space<smem>>
    %297 = arith.index_cast %296 : i32 to index
    %c0_184 = arith.constant 0 : index
    %298 = vector.load %arg2[%297, %c0_184] : memref<56x128xf32, #tpu.memory_space<vmem>>, vector<1x128xf32>
    %c3_185 = arith.constant 3 : index
    %c6_186 = arith.constant 6 : index
    %c0_187 = arith.constant 0 : index
    %299 = vector.load %arg8[%c3_185, %c6_186, %c0_187] : memref<6x8x128xf32, #tpu.memory_space<vmem>>, vector<1x1x128xf32>
    %300 = vector.shape_cast %299 : vector<1x1x128xf32> to vector<1x128xf32>
    %301 = vector.shape_cast %298 : vector<1x128xf32> to vector<1x1x128xf32>
    tpu.vector_store %arg8[%c3_185, %c6_186, %c0_187], %301 {strides = array<i32>} : memref<6x8x128xf32, #tpu.memory_space<vmem>>, vector<1x1x128xf32>,
    %c42_i32_188 = arith.constant 42 : i32
    %302 = arith.addi %0, %c42_i32_188 : i32
    %c3_i32_189 = arith.constant 3 : i32
    %303 = arith.addi %302, %c3_i32_189 : i32
    %304 = arith.index_cast %303 : i32 to index
    %305 = memref.load %arg1[%304] : memref<48xi32, #tpu.memory_space<smem>>
    %306 = arith.index_cast %305 : i32 to index
    %c0_190 = arith.constant 0 : index
    %307 = vector.load %arg2[%306, %c0_190] : memref<56x128xf32, #tpu.memory_space<vmem>>, vector<1x128xf32>
    %c3_191 = arith.constant 3 : index
    %c7_192 = arith.constant 7 : index
    %c0_193 = arith.constant 0 : index
    %308 = vector.load %arg8[%c3_191, %c7_192, %c0_193] : memref<6x8x128xf32, #tpu.memory_space<vmem>>, vector<1x1x128xf32>
    %309 = vector.shape_cast %308 : vector<1x1x128xf32> to vector<1x128xf32>
    %310 = vector.shape_cast %307 : vector<1x128xf32> to vector<1x1x128xf32>
    tpu.vector_store %arg8[%c3_191, %c7_192, %c0_193], %310 {strides = array<i32>} : memref<6x8x128xf32, #tpu.memory_space<vmem>>, vector<1x1x128xf32>,
    %c3_194 = arith.constant 3 : index
    %c0_195 = arith.constant 0 : index
    %c0_196 = arith.constant 0 : index
    %311 = vector.load %arg8[%c3_194, %c0_195, %c0_196] : memref<6x8x128xf32, #tpu.memory_space<vmem>>, vector<1x8x128xf32>
    %312 = vector.shape_cast %311 : vector<1x8x128xf32> to vector<8x128xf32>
    %313 = arith.truncf %312 : vector<8x128xf32> to vector<8x128xbf16>
    %c3_197 = arith.constant 3 : index
    %c0_198 = arith.constant 0 : index
    %c0_199 = arith.constant 0 : index
    %314 = vector.load %arg3[%c3_197, %c0_198, %c0_199] : memref<6x128x128xbf16, #tpu.memory_space<vmem>>, vector<1x128x128xbf16>
    %315 = vector.shape_cast %314 : vector<1x128x128xbf16> to vector<128x128xbf16>
    %cst_200 = arith.constant dense<0.000000e+00> : vector<8x128xf32>
    %316 = tpu.matmul %313, %315, %cst_200 {dimension_numbers = #tpu.dot_dimension_numbers<[1], [0], [0], [1], [0, 0, 1, 1], [], []>} : vector<8x128xbf16>, vector<128x128xbf16>, vector<8x128xf32> -> vector<8x128xf32>
    %317 = arith.addf %238, %316 : vector<8x128xf32>
    %c0_i32_201 = arith.constant 0 : i32
    %318 = arith.addi %0, %c0_i32_201 : i32
    %c4_i32 = arith.constant 4 : i32
    %319 = arith.addi %318, %c4_i32 : i32
    %320 = arith.index_cast %319 : i32 to index
    %321 = memref.load %arg1[%320] : memref<48xi32, #tpu.memory_space<smem>>
    %322 = arith.index_cast %321 : i32 to index
    %c0_202 = arith.constant 0 : index
    %323 = vector.load %arg2[%322, %c0_202] : memref<56x128xf32, #tpu.memory_space<vmem>>, vector<1x128xf32>
    %c4_203 = arith.constant 4 : index
    %c0_204 = arith.constant 0 : index
    %c0_205 = arith.constant 0 : index
    %324 = vector.load %arg8[%c4_203, %c0_204, %c0_205] : memref<6x8x128xf32, #tpu.memory_space<vmem>>, vector<1x1x128xf32>
    %325 = vector.shape_cast %324 : vector<1x1x128xf32> to vector<1x128xf32>
    %326 = vector.shape_cast %323 : vector<1x128xf32> to vector<1x1x128xf32>
    tpu.vector_store %arg8[%c4_203, %c0_204, %c0_205], %326 {strides = array<i32>} : memref<6x8x128xf32, #tpu.memory_space<vmem>>, vector<1x1x128xf32>,
    %c6_i32_206 = arith.constant 6 : i32
    %327 = arith.addi %0, %c6_i32_206 : i32
    %c4_i32_207 = arith.constant 4 : i32
    %328 = arith.addi %327, %c4_i32_207 : i32
    %329 = arith.index_cast %328 : i32 to index
    %330 = memref.load %arg1[%329] : memref<48xi32, #tpu.memory_space<smem>>
    %331 = arith.index_cast %330 : i32 to index
    %c0_208 = arith.constant 0 : index
    %332 = vector.load %arg2[%331, %c0_208] : memref<56x128xf32, #tpu.memory_space<vmem>>, vector<1x128xf32>
    %c4_209 = arith.constant 4 : index
    %c1_210 = arith.constant 1 : index
    %c0_211 = arith.constant 0 : index
    %333 = vector.load %arg8[%c4_209, %c1_210, %c0_211] : memref<6x8x128xf32, #tpu.memory_space<vmem>>, vector<1x1x128xf32>
    %334 = vector.shape_cast %333 : vector<1x1x128xf32> to vector<1x128xf32>
    %335 = vector.shape_cast %332 : vector<1x128xf32> to vector<1x1x128xf32>
    tpu.vector_store %arg8[%c4_209, %c1_210, %c0_211], %335 {strides = array<i32>} : memref<6x8x128xf32, #tpu.memory_space<vmem>>, vector<1x1x128xf32>,
    %c12_i32_212 = arith.constant 12 : i32
    %336 = arith.addi %0, %c12_i32_212 : i32
    %c4_i32_213 = arith.constant 4 : i32
    %337 = arith.addi %336, %c4_i32_213 : i32
    %338 = arith.index_cast %337 : i32 to index
    %339 = memref.load %arg1[%338] : memref<48xi32, #tpu.memory_space<smem>>
    %340 = arith.index_cast %339 : i32 to index
    %c0_214 = arith.constant 0 : index
    %341 = vector.load %arg2[%340, %c0_214] : memref<56x128xf32, #tpu.memory_space<vmem>>, vector<1x128xf32>
    %c4_215 = arith.constant 4 : index
    %c2_216 = arith.constant 2 : index
    %c0_217 = arith.constant 0 : index
    %342 = vector.load %arg8[%c4_215, %c2_216, %c0_217] : memref<6x8x128xf32, #tpu.memory_space<vmem>>, vector<1x1x128xf32>
    %343 = vector.shape_cast %342 : vector<1x1x128xf32> to vector<1x128xf32>
    %344 = vector.shape_cast %341 : vector<1x128xf32> to vector<1x1x128xf32>
    tpu.vector_store %arg8[%c4_215, %c2_216, %c0_217], %344 {strides = array<i32>} : memref<6x8x128xf32, #tpu.memory_space<vmem>>, vector<1x1x128xf32>,
    %c18_i32_218 = arith.constant 18 : i32
    %345 = arith.addi %0, %c18_i32_218 : i32
    %c4_i32_219 = arith.constant 4 : i32
    %346 = arith.addi %345, %c4_i32_219 : i32
    %347 = arith.index_cast %346 : i32 to index
    %348 = memref.load %arg1[%347] : memref<48xi32, #tpu.memory_space<smem>>
    %349 = arith.index_cast %348 : i32 to index
    %c0_220 = arith.constant 0 : index
    %350 = vector.load %arg2[%349, %c0_220] : memref<56x128xf32, #tpu.memory_space<vmem>>, vector<1x128xf32>
    %c4_221 = arith.constant 4 : index
    %c3_222 = arith.constant 3 : index
    %c0_223 = arith.constant 0 : index
    %351 = vector.load %arg8[%c4_221, %c3_222, %c0_223] : memref<6x8x128xf32, #tpu.memory_space<vmem>>, vector<1x1x128xf32>
    %352 = vector.shape_cast %351 : vector<1x1x128xf32> to vector<1x128xf32>
    %353 = vector.shape_cast %350 : vector<1x128xf32> to vector<1x1x128xf32>
    tpu.vector_store %arg8[%c4_221, %c3_222, %c0_223], %353 {strides = array<i32>} : memref<6x8x128xf32, #tpu.memory_space<vmem>>, vector<1x1x128xf32>,
    %c24_i32_224 = arith.constant 24 : i32
    %354 = arith.addi %0, %c24_i32_224 : i32
    %c4_i32_225 = arith.constant 4 : i32
    %355 = arith.addi %354, %c4_i32_225 : i32
    %356 = arith.index_cast %355 : i32 to index
    %357 = memref.load %arg1[%356] : memref<48xi32, #tpu.memory_space<smem>>
    %358 = arith.index_cast %357 : i32 to index
    %c0_226 = arith.constant 0 : index
    %359 = vector.load %arg2[%358, %c0_226] : memref<56x128xf32, #tpu.memory_space<vmem>>, vector<1x128xf32>
    %c4_227 = arith.constant 4 : index
    %c4_228 = arith.constant 4 : index
    %c0_229 = arith.constant 0 : index
    %360 = vector.load %arg8[%c4_227, %c4_228, %c0_229] : memref<6x8x128xf32, #tpu.memory_space<vmem>>, vector<1x1x128xf32>
    %361 = vector.shape_cast %360 : vector<1x1x128xf32> to vector<1x128xf32>
    %362 = vector.shape_cast %359 : vector<1x128xf32> to vector<1x1x128xf32>
    tpu.vector_store %arg8[%c4_227, %c4_228, %c0_229], %362 {strides = array<i32>} : memref<6x8x128xf32, #tpu.memory_space<vmem>>, vector<1x1x128xf32>,
    %c30_i32_230 = arith.constant 30 : i32
    %363 = arith.addi %0, %c30_i32_230 : i32
    %c4_i32_231 = arith.constant 4 : i32
    %364 = arith.addi %363, %c4_i32_231 : i32
    %365 = arith.index_cast %364 : i32 to index
    %366 = memref.load %arg1[%365] : memref<48xi32, #tpu.memory_space<smem>>
    %367 = arith.index_cast %366 : i32 to index
    %c0_232 = arith.constant 0 : index
    %368 = vector.load %arg2[%367, %c0_232] : memref<56x128xf32, #tpu.memory_space<vmem>>, vector<1x128xf32>
    %c4_233 = arith.constant 4 : index
    %c5_234 = arith.constant 5 : index
    %c0_235 = arith.constant 0 : index
    %369 = vector.load %arg8[%c4_233, %c5_234, %c0_235] : memref<6x8x128xf32, #tpu.memory_space<vmem>>, vector<1x1x128xf32>
    %370 = vector.shape_cast %369 : vector<1x1x128xf32> to vector<1x128xf32>
    %371 = vector.shape_cast %368 : vector<1x128xf32> to vector<1x1x128xf32>
    tpu.vector_store %arg8[%c4_233, %c5_234, %c0_235], %371 {strides = array<i32>} : memref<6x8x128xf32, #tpu.memory_space<vmem>>, vector<1x1x128xf32>,
    %c36_i32_236 = arith.constant 36 : i32
    %372 = arith.addi %0, %c36_i32_236 : i32
    %c4_i32_237 = arith.constant 4 : i32
    %373 = arith.addi %372, %c4_i32_237 : i32
    %374 = arith.index_cast %373 : i32 to index
    %375 = memref.load %arg1[%374] : memref<48xi32, #tpu.memory_space<smem>>
    %376 = arith.index_cast %375 : i32 to index
    %c0_238 = arith.constant 0 : index
    %377 = vector.load %arg2[%376, %c0_238] : memref<56x128xf32, #tpu.memory_space<vmem>>, vector<1x128xf32>
    %c4_239 = arith.constant 4 : index
    %c6_240 = arith.constant 6 : index
    %c0_241 = arith.constant 0 : index
    %378 = vector.load %arg8[%c4_239, %c6_240, %c0_241] : memref<6x8x128xf32, #tpu.memory_space<vmem>>, vector<1x1x128xf32>
    %379 = vector.shape_cast %378 : vector<1x1x128xf32> to vector<1x128xf32>
    %380 = vector.shape_cast %377 : vector<1x128xf32> to vector<1x1x128xf32>
    tpu.vector_store %arg8[%c4_239, %c6_240, %c0_241], %380 {strides = array<i32>} : memref<6x8x128xf32, #tpu.memory_space<vmem>>, vector<1x1x128xf32>,
    %c42_i32_242 = arith.constant 42 : i32
    %381 = arith.addi %0, %c42_i32_242 : i32
    %c4_i32_243 = arith.constant 4 : i32
    %382 = arith.addi %381, %c4_i32_243 : i32
    %383 = arith.index_cast %382 : i32 to index
    %384 = memref.load %arg1[%383] : memref<48xi32, #tpu.memory_space<smem>>
    %385 = arith.index_cast %384 : i32 to index
    %c0_244 = arith.constant 0 : index
    %386 = vector.load %arg2[%385, %c0_244] : memref<56x128xf32, #tpu.memory_space<vmem>>, vector<1x128xf32>
    %c4_245 = arith.constant 4 : index
    %c7_246 = arith.constant 7 : index
    %c0_247 = arith.constant 0 : index
    %387 = vector.load %arg8[%c4_245, %c7_246, %c0_247] : memref<6x8x128xf32, #tpu.memory_space<vmem>>, vector<1x1x128xf32>
    %388 = vector.shape_cast %387 : vector<1x1x128xf32> to vector<1x128xf32>
    %389 = vector.shape_cast %386 : vector<1x128xf32> to vector<1x1x128xf32>
    tpu.vector_store %arg8[%c4_245, %c7_246, %c0_247], %389 {strides = array<i32>} : memref<6x8x128xf32, #tpu.memory_space<vmem>>, vector<1x1x128xf32>,
    %c4_248 = arith.constant 4 : index
    %c0_249 = arith.constant 0 : index
    %c0_250 = arith.constant 0 : index
    %390 = vector.load %arg8[%c4_248, %c0_249, %c0_250] : memref<6x8x128xf32, #tpu.memory_space<vmem>>, vector<1x8x128xf32>
    %391 = vector.shape_cast %390 : vector<1x8x128xf32> to vector<8x128xf32>
    %392 = arith.truncf %391 : vector<8x128xf32> to vector<8x128xbf16>
    %c4_251 = arith.constant 4 : index
    %c0_252 = arith.constant 0 : index
    %c0_253 = arith.constant 0 : index
    %393 = vector.load %arg3[%c4_251, %c0_252, %c0_253] : memref<6x128x128xbf16, #tpu.memory_space<vmem>>, vector<1x128x128xbf16>
    %394 = vector.shape_cast %393 : vector<1x128x128xbf16> to vector<128x128xbf16>
    %cst_254 = arith.constant dense<0.000000e+00> : vector<8x128xf32>
    %395 = tpu.matmul %392, %394, %cst_254 {dimension_numbers = #tpu.dot_dimension_numbers<[1], [0], [0], [1], [0, 0, 1, 1], [], []>} : vector<8x128xbf16>, vector<128x128xbf16>, vector<8x128xf32> -> vector<8x128xf32>
    %396 = arith.addf %317, %395 : vector<8x128xf32>
    %c0_i32_255 = arith.constant 0 : i32
    %397 = arith.addi %0, %c0_i32_255 : i32
    %c5_i32 = arith.constant 5 : i32
    %398 = arith.addi %397, %c5_i32 : i32
    %399 = arith.index_cast %398 : i32 to index
    %400 = memref.load %arg1[%399] : memref<48xi32, #tpu.memory_space<smem>>
    %401 = arith.index_cast %400 : i32 to index
    %c0_256 = arith.constant 0 : index
    %402 = vector.load %arg2[%401, %c0_256] : memref<56x128xf32, #tpu.memory_space<vmem>>, vector<1x128xf32>
    %c5_257 = arith.constant 5 : index
    %c0_258 = arith.constant 0 : index
    %c0_259 = arith.constant 0 : index
    %403 = vector.load %arg8[%c5_257, %c0_258, %c0_259] : memref<6x8x128xf32, #tpu.memory_space<vmem>>, vector<1x1x128xf32>
    %404 = vector.shape_cast %403 : vector<1x1x128xf32> to vector<1x128xf32>
    %405 = vector.shape_cast %402 : vector<1x128xf32> to vector<1x1x128xf32>
    tpu.vector_store %arg8[%c5_257, %c0_258, %c0_259], %405 {strides = array<i32>} : memref<6x8x128xf32, #tpu.memory_space<vmem>>, vector<1x1x128xf32>,
    %c6_i32_260 = arith.constant 6 : i32
    %406 = arith.addi %0, %c6_i32_260 : i32
    %c5_i32_261 = arith.constant 5 : i32
    %407 = arith.addi %406, %c5_i32_261 : i32
    %408 = arith.index_cast %407 : i32 to index
    %409 = memref.load %arg1[%408] : memref<48xi32, #tpu.memory_space<smem>>
    %410 = arith.index_cast %409 : i32 to index
    %c0_262 = arith.constant 0 : index
    %411 = vector.load %arg2[%410, %c0_262] : memref<56x128xf32, #tpu.memory_space<vmem>>, vector<1x128xf32>
    %c5_263 = arith.constant 5 : index
    %c1_264 = arith.constant 1 : index
    %c0_265 = arith.constant 0 : index
    %412 = vector.load %arg8[%c5_263, %c1_264, %c0_265] : memref<6x8x128xf32, #tpu.memory_space<vmem>>, vector<1x1x128xf32>
    %413 = vector.shape_cast %412 : vector<1x1x128xf32> to vector<1x128xf32>
    %414 = vector.shape_cast %411 : vector<1x128xf32> to vector<1x1x128xf32>
    tpu.vector_store %arg8[%c5_263, %c1_264, %c0_265], %414 {strides = array<i32>} : memref<6x8x128xf32, #tpu.memory_space<vmem>>, vector<1x1x128xf32>,
    %c12_i32_266 = arith.constant 12 : i32
    %415 = arith.addi %0, %c12_i32_266 : i32
    %c5_i32_267 = arith.constant 5 : i32
    %416 = arith.addi %415, %c5_i32_267 : i32
    %417 = arith.index_cast %416 : i32 to index
    %418 = memref.load %arg1[%417] : memref<48xi32, #tpu.memory_space<smem>>
    %419 = arith.index_cast %418 : i32 to index
    %c0_268 = arith.constant 0 : index
    %420 = vector.load %arg2[%419, %c0_268] : memref<56x128xf32, #tpu.memory_space<vmem>>, vector<1x128xf32>
    %c5_269 = arith.constant 5 : index
    %c2_270 = arith.constant 2 : index
    %c0_271 = arith.constant 0 : index
    %421 = vector.load %arg8[%c5_269, %c2_270, %c0_271] : memref<6x8x128xf32, #tpu.memory_space<vmem>>, vector<1x1x128xf32>
    %422 = vector.shape_cast %421 : vector<1x1x128xf32> to vector<1x128xf32>
    %423 = vector.shape_cast %420 : vector<1x128xf32> to vector<1x1x128xf32>
    tpu.vector_store %arg8[%c5_269, %c2_270, %c0_271], %423 {strides = array<i32>} : memref<6x8x128xf32, #tpu.memory_space<vmem>>, vector<1x1x128xf32>,
    %c18_i32_272 = arith.constant 18 : i32
    %424 = arith.addi %0, %c18_i32_272 : i32
    %c5_i32_273 = arith.constant 5 : i32
    %425 = arith.addi %424, %c5_i32_273 : i32
    %426 = arith.index_cast %425 : i32 to index
    %427 = memref.load %arg1[%426] : memref<48xi32, #tpu.memory_space<smem>>
    %428 = arith.index_cast %427 : i32 to index
    %c0_274 = arith.constant 0 : index
    %429 = vector.load %arg2[%428, %c0_274] : memref<56x128xf32, #tpu.memory_space<vmem>>, vector<1x128xf32>
    %c5_275 = arith.constant 5 : index
    %c3_276 = arith.constant 3 : index
    %c0_277 = arith.constant 0 : index
    %430 = vector.load %arg8[%c5_275, %c3_276, %c0_277] : memref<6x8x128xf32, #tpu.memory_space<vmem>>, vector<1x1x128xf32>
    %431 = vector.shape_cast %430 : vector<1x1x128xf32> to vector<1x128xf32>
    %432 = vector.shape_cast %429 : vector<1x128xf32> to vector<1x1x128xf32>
    tpu.vector_store %arg8[%c5_275, %c3_276, %c0_277], %432 {strides = array<i32>} : memref<6x8x128xf32, #tpu.memory_space<vmem>>, vector<1x1x128xf32>,
    %c24_i32_278 = arith.constant 24 : i32
    %433 = arith.addi %0, %c24_i32_278 : i32
    %c5_i32_279 = arith.constant 5 : i32
    %434 = arith.addi %433, %c5_i32_279 : i32
    %435 = arith.index_cast %434 : i32 to index
    %436 = memref.load %arg1[%435] : memref<48xi32, #tpu.memory_space<smem>>
    %437 = arith.index_cast %436 : i32 to index
    %c0_280 = arith.constant 0 : index
    %438 = vector.load %arg2[%437, %c0_280] : memref<56x128xf32, #tpu.memory_space<vmem>>, vector<1x128xf32>
    %c5_281 = arith.constant 5 : index
    %c4_282 = arith.constant 4 : index
    %c0_283 = arith.constant 0 : index
    %439 = vector.load %arg8[%c5_281, %c4_282, %c0_283] : memref<6x8x128xf32, #tpu.memory_space<vmem>>, vector<1x1x128xf32>
    %440 = vector.shape_cast %439 : vector<1x1x128xf32> to vector<1x128xf32>
    %441 = vector.shape_cast %438 : vector<1x128xf32> to vector<1x1x128xf32>
    tpu.vector_store %arg8[%c5_281, %c4_282, %c0_283], %441 {strides = array<i32>} : memref<6x8x128xf32, #tpu.memory_space<vmem>>, vector<1x1x128xf32>,
    %c30_i32_284 = arith.constant 30 : i32
    %442 = arith.addi %0, %c30_i32_284 : i32
    %c5_i32_285 = arith.constant 5 : i32
    %443 = arith.addi %442, %c5_i32_285 : i32
    %444 = arith.index_cast %443 : i32 to index
    %445 = memref.load %arg1[%444] : memref<48xi32, #tpu.memory_space<smem>>
    %446 = arith.index_cast %445 : i32 to index
    %c0_286 = arith.constant 0 : index
    %447 = vector.load %arg2[%446, %c0_286] : memref<56x128xf32, #tpu.memory_space<vmem>>, vector<1x128xf32>
    %c5_287 = arith.constant 5 : index
    %c5_288 = arith.constant 5 : index
    %c0_289 = arith.constant 0 : index
    %448 = vector.load %arg8[%c5_287, %c5_288, %c0_289] : memref<6x8x128xf32, #tpu.memory_space<vmem>>, vector<1x1x128xf32>
    %449 = vector.shape_cast %448 : vector<1x1x128xf32> to vector<1x128xf32>
    %450 = vector.shape_cast %447 : vector<1x128xf32> to vector<1x1x128xf32>
    tpu.vector_store %arg8[%c5_287, %c5_288, %c0_289], %450 {strides = array<i32>} : memref<6x8x128xf32, #tpu.memory_space<vmem>>, vector<1x1x128xf32>,
    %c36_i32_290 = arith.constant 36 : i32
    %451 = arith.addi %0, %c36_i32_290 : i32
    %c5_i32_291 = arith.constant 5 : i32
    %452 = arith.addi %451, %c5_i32_291 : i32
    %453 = arith.index_cast %452 : i32 to index
    %454 = memref.load %arg1[%453] : memref<48xi32, #tpu.memory_space<smem>>
    %455 = arith.index_cast %454 : i32 to index
    %c0_292 = arith.constant 0 : index
    %456 = vector.load %arg2[%455, %c0_292] : memref<56x128xf32, #tpu.memory_space<vmem>>, vector<1x128xf32>
    %c5_293 = arith.constant 5 : index
    %c6_294 = arith.constant 6 : index
    %c0_295 = arith.constant 0 : index
    %457 = vector.load %arg8[%c5_293, %c6_294, %c0_295] : memref<6x8x128xf32, #tpu.memory_space<vmem>>, vector<1x1x128xf32>
    %458 = vector.shape_cast %457 : vector<1x1x128xf32> to vector<1x128xf32>
    %459 = vector.shape_cast %456 : vector<1x128xf32> to vector<1x1x128xf32>
    tpu.vector_store %arg8[%c5_293, %c6_294, %c0_295], %459 {strides = array<i32>} : memref<6x8x128xf32, #tpu.memory_space<vmem>>, vector<1x1x128xf32>,
    %c42_i32_296 = arith.constant 42 : i32
    %460 = arith.addi %0, %c42_i32_296 : i32
    %c5_i32_297 = arith.constant 5 : i32
    %461 = arith.addi %460, %c5_i32_297 : i32
    %462 = arith.index_cast %461 : i32 to index
    %463 = memref.load %arg1[%462] : memref<48xi32, #tpu.memory_space<smem>>
    %464 = arith.index_cast %463 : i32 to index
    %c0_298 = arith.constant 0 : index
    %465 = vector.load %arg2[%464, %c0_298] : memref<56x128xf32, #tpu.memory_space<vmem>>, vector<1x128xf32>
    %c5_299 = arith.constant 5 : index
    %c7_300 = arith.constant 7 : index
    %c0_301 = arith.constant 0 : index
    %466 = vector.load %arg8[%c5_299, %c7_300, %c0_301] : memref<6x8x128xf32, #tpu.memory_space<vmem>>, vector<1x1x128xf32>
    %467 = vector.shape_cast %466 : vector<1x1x128xf32> to vector<1x128xf32>
    %468 = vector.shape_cast %465 : vector<1x128xf32> to vector<1x1x128xf32>
    tpu.vector_store %arg8[%c5_299, %c7_300, %c0_301], %468 {strides = array<i32>} : memref<6x8x128xf32, #tpu.memory_space<vmem>>, vector<1x1x128xf32>,
    %c5_302 = arith.constant 5 : index
    %c0_303 = arith.constant 0 : index
    %c0_304 = arith.constant 0 : index
    %469 = vector.load %arg8[%c5_302, %c0_303, %c0_304] : memref<6x8x128xf32, #tpu.memory_space<vmem>>, vector<1x8x128xf32>
    %470 = vector.shape_cast %469 : vector<1x8x128xf32> to vector<8x128xf32>
    %471 = arith.truncf %470 : vector<8x128xf32> to vector<8x128xbf16>
    %c5_305 = arith.constant 5 : index
    %c0_306 = arith.constant 0 : index
    %c0_307 = arith.constant 0 : index
    %472 = vector.load %arg3[%c5_305, %c0_306, %c0_307] : memref<6x128x128xbf16, #tpu.memory_space<vmem>>, vector<1x128x128xbf16>
    %473 = vector.shape_cast %472 : vector<1x128x128xbf16> to vector<128x128xbf16>
    %cst_308 = arith.constant dense<0.000000e+00> : vector<8x128xf32>
    %474 = tpu.matmul %471, %473, %cst_308 {dimension_numbers = #tpu.dot_dimension_numbers<[1], [0], [0], [1], [0, 0, 1, 1], [], []>} : vector<8x128xbf16>, vector<128x128xbf16>, vector<8x128xf32> -> vector<8x128xf32>
    %475 = arith.addf %396, %474 : vector<8x128xf32>
    %c0_309 = arith.constant 0 : index
    %c0_310 = arith.constant 0 : index
    %476 = vector.load %arg4[%c0_309, %c0_310] : memref<1x128xf32, #tpu.memory_space<vmem>>, vector<1x128xf32>
    %477 = vector.broadcast %476 : vector<1x128xf32> to vector<8x128xf32>
    %478 = arith.addf %475, %477 : vector<8x128xf32>
    %cst_311 = arith.constant 0.000000e+00 : f32
    %479 = vector.broadcast %cst_311 : f32 to vector<8x128xf32>
    %480 = arith.maximumf %478, %479 : vector<8x128xf32>
    %481 = arith.truncf %480 : vector<8x128xf32> to vector<8x128xbf16>
    %c0_312 = arith.constant 0 : index
    %c0_313 = arith.constant 0 : index
    %482 = vector.load %arg5[%c0_312, %c0_313] : memref<128x128xbf16, #tpu.memory_space<vmem>>, vector<128x128xbf16>
    %cst_314 = arith.constant dense<0.000000e+00> : vector<8x128xf32>
    %483 = tpu.matmul %481, %482, %cst_314 {dimension_numbers = #tpu.dot_dimension_numbers<[1], [0], [0], [1], [0, 0, 1, 1], [], []>} : vector<8x128xbf16>, vector<128x128xbf16>, vector<8x128xf32> -> vector<8x128xf32>
    %c0_315 = arith.constant 0 : index
    %c0_316 = arith.constant 0 : index
    %484 = vector.load %arg6[%c0_315, %c0_316] : memref<1x128xf32, #tpu.memory_space<vmem>>, vector<1x128xf32>
    %485 = vector.broadcast %484 : vector<1x128xf32> to vector<8x128xf32>
    %486 = arith.addf %483, %485 : vector<8x128xf32>
    %c0_317 = arith.constant 0 : index
    %c0_318 = arith.constant 0 : index
    %487 = vector.load %arg7[%c0_317, %c0_318] : memref<8x128xf32, #tpu.memory_space<vmem>>, vector<8x128xf32>
    tpu.vector_store %arg7[%c0_317, %c0_318], %486 {strides = array<i32>} : memref<8x128xf32, #tpu.memory_space<vmem>>, vector<8x128xf32>,
    return
  }
  func.func @transform_0(%arg0: i32, %arg1: memref<48xi32, #tpu.memory_space<smem>>) -> (i32, i32) {
    %c0_i32 = arith.constant 0 : i32
    %c0_i32_0 = arith.constant 0 : i32
    %c0_i32_1 = arith.constant 0 : i32
    return %c0_i32, %c0_i32_0 : i32, i32
  }
  func.func @transform_1(%arg0: i32, %arg1: memref<48xi32, #tpu.memory_space<smem>>) -> (i32, i32, i32) {
    %c0_i32 = arith.constant 0 : i32
    %c0_i32_0 = arith.constant 0 : i32
    %c0_i32_1 = arith.constant 0 : i32
    %c0_i32_2 = arith.constant 0 : i32
    return %c0_i32, %c0_i32_0, %c0_i32_1 : i32, i32, i32
  }
  func.func @transform_2(%arg0: i32, %arg1: memref<48xi32, #tpu.memory_space<smem>>) -> (i32, i32) {
    %c0_i32 = arith.constant 0 : i32
    %c0_i32_0 = arith.constant 0 : i32
    %c0_i32_1 = arith.constant 0 : i32
    return %c0_i32, %c0_i32_0 : i32, i32
  }
  func.func @transform_3(%arg0: i32, %arg1: memref<48xi32, #tpu.memory_space<smem>>) -> (i32, i32) {
    %c0_i32 = arith.constant 0 : i32
    %c0_i32_0 = arith.constant 0 : i32
    %c0_i32_1 = arith.constant 0 : i32
    return %c0_i32, %c0_i32_0 : i32, i32
  }
  func.func @transform_4(%arg0: i32, %arg1: memref<48xi32, #tpu.memory_space<smem>>) -> (i32, i32) {
    %c0_i32 = arith.constant 0 : i32
    %c0_i32_0 = arith.constant 0 : i32
    %c0_i32_1 = arith.constant 0 : i32
    return %c0_i32, %c0_i32_0 : i32, i32
  }
  func.func @transform_5(%arg0: i32, %arg1: memref<48xi32, #tpu.memory_space<smem>>) -> (i32, i32) {
    %c0_i32 = arith.constant 0 : i32
    %c0_i32_0 = arith.constant 0 : i32
    return %arg0, %c0_i32 : i32, i32
  }
}

</mosaic_0001>

<bundles_post_ra>
// kernel: tpu_custom_call.1
= control target key start
LH: loop header
LB: loop body
LE: loop exit
PB: predicated region body
PF: predicated region fallthrough
CT: control target
= control target key end

     0   :  { %s1906_s0 = inlined_call_operand.hbm [shape: s32[48], index: 0, kind: input, shape index: {}]   ;;  %s1907_s1 = inlined_call_operand.hbm [shape: f32[56,128], index: 1, kind: input, shape index: {}]   ;;  %s1908_s2 = inlined_call_operand.hbm [shape: bf16[6,128,128], index: 2, kind: input, shape index: {}]   ;;  %s1909_s3 = inlined_call_operand.vmem [shape: f32[1,128], index: 3, kind: input, shape index: {}]   ;;  %s1910_s4 = inlined_call_operand.hbm [shape: bf16[128,128], index: 4, kind: input, shape index: {}]   ;;  %s1911_s5 = inlined_call_operand.vmem [shape: f32[1,128], index: 5, kind: input, shape index: {}]   ;;  %s1912_s6 = inlined_call_operand.hbm [shape: f32[8,128], index: 6, kind: output, shape index: {}]  }
   0x1   :  { %s1519_s23 = scalar_lea.hbm %s1906_s0, 16 }
   0x2   :  { %p1520_p0 = scmp.ne.s32.totalorder %s1906_s0, %s1519_s23  ;;  %p1523_p1 = scmp.lt.u32.totalorder %s1519_s23, %s1906_s0 }
   0x4   :  { %p1525_p2 = pnand %p1523_p1, %p1520_p0 }
   0x6   :  { %1528 = shalt.err (!%p1525_p2)  }
   0x7   :  { %s1625_s28 = smov [#allocation4]  }
   0x8   :  { %12 = dma.hbm_to_smem %s1906_s0, 16, %s1625_s28, [#allocation3] }
   0x9   :  { %1617 = dma.done.wait [#allocation3], 16 }
   0xa   :  { %1618 = vsyncadd [#allocation3], 4294967280 }
   0xb   :  { %14 = sfence }
   0xc   :  { %15 = vsyncpa [#allocation6], 0 }
   0xd   :  { %16 = vsyncpa [#allocation9], 0 }
   0xe   :  { %17 = vsyncpa [#allocation7], 0  ;;  %s1626_s7 = smov [#allocation8]   ;;  %s1529_s11 = scalar_lea.hbm %s1908_s2, 6144 }
   0xf   :  { %s35_s8 = sshll.u32 %s1626_s7, 4  ;;  %p1530_p3 = scmp.ne.s32.totalorder %s1908_s2, %s1529_s11  ;;  %s36_s8 = int_to_ptr.vmem [resolvable:$true] %s35_s8 }
  0x10   :  { %p1533_p4 = scmp.lt.u32.totalorder %s1529_s11, %s1908_s2 }
  0x12   :  { %p1535_p5 = pnand %p1533_p4, %p1530_p3 }
  0x14   :  { %1538 = shalt.err (!%p1535_p5)
}
  0x15   :  { %s1539_s0 = scalar_lea.vmem %s36_s8, 6144  ;;  %p1544_p7 = scmp.lt.s32.totalorder %s36_s8, %s36_s8 }
  0x16   :  { %p1540_p6 = scmp.ne.s32.totalorder %s36_s8, %s1539_s0  ;;  %p1545_p8 = scmp.lt.s32.totalorder %s1539_s0, %s1539_s0 }
  0x18   :  { %p1546_p9 = por %p1545_p8, %p1544_p7 }
  0x1a   :  { %p1547_p10 = pnand %p1546_p9, %p1540_p6 }
  0x1c   :  { %1550 = shalt.err (!%p1547_p10)
}
  0x1d   :  { %s1627_s16 = smov 64   ;;  %s1628_s17 = smov 4  }
  0x1e   :  { %41 = dma.hbm_to_vmem [thread:$0]  %s1908_s2, 6144, %s36_s8, [#allocation9], %s1627_s16, %s1627_s16, %s1628_s17  }
  0x1f   :  { %s1629_s20 = smov [#allocation5]   ;;  %s1551_s24 = scalar_lea.hbm %s1907_s1, 896 }
  0x20   :  { %s23_s21 = sshll.u32 %s1629_s20, 4  ;;  %p1552_p11 = scmp.ne.s32.totalorder %s1907_s1, %s1551_s24  ;;  %s24_s21 = int_to_ptr.vmem [resolvable:$true] %s23_s21 }
  0x21   :  { %p1555_p12 = scmp.lt.u32.totalorder %s1551_s24, %s1907_s1 }
  0x23   :  { %p1557_p13 = pnand %p1555_p12, %p1552_p11 }
  0x25   :  { %1560 = shalt.err (!%p1557_p13)
}
  0x26   :  { %s1561_s29 = scalar_lea.vmem %s24_s21, 896  ;;  %p1566_p1 = scmp.lt.s32.totalorder %s24_s21, %s24_s21 }
  0x27   :  { %p1562_p0 = scmp.ne.s32.totalorder %s24_s21, %s1561_s29  ;;  %p1567_p2 = scmp.lt.s32.totalorder %s1561_s29, %s1561_s29 }
  0x29   :  { %p1568_p3 = por %p1567_p2, %p1566_p1 }
  0x2b   :  { %p1569_p4 = pnand %p1568_p3, %p1562_p0 }
  0x2d   :  { %1572 = shalt.err (!%p1569_p4)
}
  0x2e   :  { %s1630_s2 = smov 128   ;;  %s1631_s30 = smov 8  }
  0x2f   :  { %29 = dma.hbm_to_vmem [thread:$0]  %s1907_s1, 896, %s24_s21, [#allocation6], %s1630_s2, %s1630_s2, %s1631_s30  }
  0x30   :  { %s1632_s9 = smov [#allocation10]   ;;  %s1573_s13 = scalar_lea.hbm %s1910_s4, 1024 }
  0x31   :  { %s49_s10 = sshll.u32 %s1632_s9, 4  ;;  %p1574_p5 = scmp.ne.s32.totalorder %s1910_s4, %s1573_s13  ;;  %s50_s10 = int_to_ptr.vmem [resolvable:$true] %s49_s10 }
  0x32   :  { %p1577_p6 = scmp.lt.u32.totalorder %s1573_s13, %s1910_s4 }
  0x34   :  { %p1579_p7 = pnand %p1577_p6, %p1574_p5 }
  0x36   :  { %1582 = shalt.err (!%p1579_p7)
}
  0x37   :  { %s1583_s19 = scalar_lea.vmem %s50_s10, 1024  ;;  %p1588_p9 = scmp.lt.s32.totalorder %s50_s10, %s50_s10 }
  0x38   :  { %p1584_p8 = scmp.ne.s32.totalorder %s50_s10, %s1583_s19  ;;  %p1589_p10 = scmp.lt.s32.totalorder %s1583_s19, %s1583_s19 }
  0x3a   :  { %p1590_p11 = por %p1589_p10, %p1588_p9 }
  0x3c   :  { %p1591_p12 = pnand %p1590_p11, %p1584_p8 }
  0x3e   :  { %1594 = shalt.err (!%p1591_p12)
}
  0x3f   :  { %55 = dma.hbm_to_vmem [thread:$0]  %s1910_s4, 1024, %s50_s10, [#allocation9], %s1627_s16, %s1627_s16, %s1628_s17  }
  0x40   :  { %1619 = dma.done.wait [#allocation6], 896  }
  0x41   :  { %1620 = vsyncadd [#allocation6], 4294966400 }
  0x42   :  { %1621 = dma.done.wait [#allocation9], 7168  }
  0x43   :  { %1622 = vsyncadd [#allocation9], 4294960128  ;;  %v1633_v0 = vmov 0.0   ;;  %vm1634_vm0 = vmmov 0   ;;  %s1731_s21 = sld [smem:[#allocation4 + $0x1]]  ;;  %s1733_s22 = sld [smem:[#allocation4 + $0x7]] }
  0x44   :  { %1312 = vmatprep.subr.bf16.mxu0 %v1633_v0  ;;  %1332 = vmatprep.subr.bf16.mxu1 %v1633_v0  ;;  %s1735_s4 = sld [smem:[#allocation4 + $0xd]]  ;;  %s1737_s16 = sld [smem:[#allocation4 + $0x13]]  ;;  %v1463_v1 = vld [vmem:[#allocation8 + $0x40] sm:$0xff]   ;;  %v1465_v3 = vld [vmem:[#allocation8 + $0x48] sm:$0xff]   ;;  %v1467_v5 = vld [vmem:[#allocation8 + $0x50] sm:$0xff]  }
  0x45   :  { %1328 = vmatprep.mubr.msk.bf16.mxu0 %vm1634_vm0, %v1633_v0  ;;  %1348 = vmatprep.mubr.msk.bf16.mxu1 %vm1634_vm0, %v1633_v0  ;;  %s1739_s17 = sld [smem:[#allocation4 + $0x19]]  ;;  %s1741_s23 = sld [smem:[#allocation4 + $0x1f]]  ;;  %v1464_v2 = vld [vmem:[#allocation8] sm:$0xff]   ;;  %v1466_v4 = vld [vmem:[#allocation8 + $0x8] sm:$0xff]   ;;  %v1468_v6 = vld [vmem:[#allocation8 + $0x10] sm:$0xff]  }
  0x46   :  { %s1743_s24 = sld [smem:[#allocation4 + $0x25]]  ;;  %s1745_s25 = sld [smem:[#allocation4 + $0x2b]]  ;;  %1313 = vmatpush3.bf16.msra.mxu0 %v1463_v1  ;;  %1333 = vmatpush3.bf16.msra.mxu1 %v1464_v2  ;;  %v1469_v7 = vld [vmem:[#allocation8 + $0x58] sm:$0xff]   ;;  %v1471_v9 = vld [vmem:[#allocation8 + $0x60] sm:$0xff]   ;;  %v1473_v11 = vld [vmem:[#allocation8 + $0x68] sm:$0xff]  }
  0x47   :  { %s1747_s26 = sld [smem:[#allocation4]]  ;;  %s1749_s27 = sld [smem:[#allocation4 + $0x6]]  ;;  %1314 = vmatprep.subr.bf16.mxu0 %v1633_v0  ;;  %1334 = vmatprep.subr.bf16.mxu1 %v1633_v0  ;;  %v1470_v8 = vld [vmem:[#allocation8 + $0x18] sm:$0xff]   ;;  %v1472_v10 = vld [vmem:[#allocation8 + $0x20] sm:$0xff]   ;;  %v1474_v15 = vld [vmem:[#allocation8 + $0x28] sm:$0xff]  }
  0x48   :  { %s1753_s28 = sld [smem:[#allocation4 + $0xc]]  ;;  %s1755_s29 = sld [smem:[#allocation4 + $0x12]]  ;;  %v1475_v25 = vld [vmem:[#allocation8 + $0x70] sm:$0xff]   ;;  %v1477_v27 = vld [vmem:[#allocation8 + $0x78] sm:$0xff]   ;;  %v1479_v35 = vld [vmem:[#allocation8 + $0x80] sm:$0xff]  }
  0x49   :  { %s128_s2 = scalar_lea.vmem [#allocation5], %s1731_s21  ;;  %s134_s30 = scalar_lea.vmem [#allocation5], %s1733_s22  ;;  %v1476_v26 = vld [vmem:[#allocation8 + $0x30] sm:$0xff]   ;;  %v1478_v28 = vld [vmem:[#allocation8 + $0x38] sm:$0xff]   ;;  %v1481_v36 = vld [vmem:[#allocation8 + $0x88] sm:$0xff]  }
  0x4a   :  { %1315 = vmatpush3.bf16.msra.mxu0 %v1465_v3  ;;  %1335 = vmatpush3.bf16.msra.mxu1 %v1466_v4  ;;  %v129_v12 = vld [vmem:[%s128_s2] sm:$0x1]  ;;  %s139_s7 = scalar_lea.vmem [#allocation5], %s1735_s4  ;;  %s144_s8 = scalar_lea.vmem [#allocation5], %s1737_s16  ;;  %v1480_v38 = vld [vmem:[#allocation8 + $0xc0] sm:$0xff]   ;;  %v1483_v40 = vld [vmem:[#allocation8 + $0x90] sm:$0xff]  }
  0x4b   :  { %1316 = vmatprep.subr.bf16.mxu0 %v1633_v0  ;;  %1336 = vmatprep.subr.bf16.mxu1 %v1633_v0  ;;  %v135_v13 = vld [vmem:[%s134_s30] sm:$0x1]  ;;  %131 = vst [vmem:[#allocation2 + $0x8] sm:$0x1] %v129_v12  ;;  %s149_s9 = scalar_lea.vmem [#allocation5], %s1739_s17  ;;  %s154_s10 = scalar_lea.vmem [#allocation5], %s1741_s23 }
  0x4c   :  { %v140_v14 = vld [vmem:[%s139_s7] sm:$0x1]  ;;  %136 = vst [vmem:[#allocation2 + $0x9] sm:$0x1] %v135_v13  ;;  %s159_s11 = scalar_lea.vmem [#allocation5], %s1743_s24  ;;  %s164_s12 = scalar_lea.vmem [#allocation5], %s1745_s25 }
  0x4d   :  { %141 = vst [vmem:[#allocation2 + $0xa] sm:$0x1] %v140_v14  ;;  %v145_v16 = vld [vmem:[%s144_s8] sm:$0x1]  ;;  %s70_s13 = scalar_lea.vmem [#allocation5], %s1747_s26  ;;  %s75_s14 = scalar_lea.vmem [#allocation5], %s1749_s27 }
  0x4e   :  { %1317 = vmatpush3.bf16.msra.mxu0 %v1467_v5  ;;  %1337 = vmatpush3.bf16.msra.mxu1 %v1468_v6  ;;  %v150_v17 = vld [vmem:[%s149_s9] sm:$0x1]  ;;  %146 = vst [vmem:[#allocation2 + $0xb] sm:$0x1] %v145_v16  ;;  %s80_s15 = scalar_lea.vmem [#allocation5], %s1753_s28  ;;  %s85_s0 = scalar_lea.vmem [#allocation5], %s1755_s29 }
  0x4f   :  { %1318 = vmatprep.subr.bf16.mxu0 %v1633_v0  ;;  %1338 = vmatprep.subr.bf16.mxu1 %v1633_v0  ;;  %v155_v18 = vld [vmem:[%s154_s10] sm:$0x1]  ;;  %151 = vst [vmem:[#allocation2 + $0xc] sm:$0x1] %v150_v17  ;;  %s1147_s18 = sld [smem:[#allocation4 + $0x18]]  ;;  %s1148_s19 = sld [smem:[#allocation4 + $0x1e]] }
  0x50   :  { %156 = vst [vmem:[#allocation2 + $0xd] sm:$0x1] %v155_v18  ;;  %v160_v19 = vld [vmem:[%s159_s11] sm:$0x1]  ;;  %s1149_s1 = sld [smem:[#allocation4 + $0x24]]  ;;  %s1150_s20 = sld [smem:[#allocation4 + $0x2a]] }
  0x51   :  { %v165_v20 = vld [vmem:[%s164_s12] sm:$0x1]  ;;  %161 = vst [vmem:[#allocation2 + $0xe] sm:$0x1] %v160_v19  ;;  %s1175_s17 = sld [smem:[#allocation4 + $0x2]]  ;;  %v1482_v41 = vld [vmem:[#allocation8 + $0xc8] sm:$0xff]  }
  0x52   :  { %1319 = vmatpush3.bf16.msra.mxu0 %v1469_v7  ;;  %1339 = vmatpush3.bf16.msra.mxu1 %v1470_v8  ;;  %v71_v21 = vld [vmem:[%s70_s13] sm:$0x1]  ;;  %166 = vst [vmem:[#allocation2 + $0xf] sm:$0x1] %v165_v20  ;;  %s1176_s23 = sld [smem:[#allocation4 + $0x8]]  ;;  %s1177_s24 = sld [smem:[#allocation4 + $0xe]] }
  0x53   :  { %1320 = vmatprep.subr.bf16.mxu0 %v1633_v0  ;;  %1340 = vmatprep.subr.bf16.mxu1 %v1633_v0  ;;  %72 = vst [vmem:[#allocation2] sm:$0x1] %v71_v21  ;;  %v76_v22 = vld [vmem:[%s75_s14] sm:$0x1]  ;;  %s1789_s25 = sld [smem:[#allocation4 + $0x14]]  ;;  %s1792_s26 = sld [smem:[#allocation4 + $0x1a]] }
  0x54   :  { %v81_v23 = vld [vmem:[%s80_s15] sm:$0x1]  ;;  %77 = vst [vmem:[#allocation2 + $0x1] sm:$0x1] %v76_v22  ;;  %s1794_s27 = sld [smem:[#allocation4 + $0x20]]  ;;  %v1484_v42 = vld [vmem:[#allocation8 + $0xd0] sm:$0xff]  }
  0x55   :  { %v86_v24 = vld [vmem:[%s85_s0] sm:$0x1]  ;;  %82 = vst [vmem:[#allocation2 + $0x2] sm:$0x1] %v81_v23  ;;  %s90_s21 = scalar_lea.vmem [#allocation5], %s1147_s18  ;;  %s95_s22 = scalar_lea.vmem [#allocation5], %s1148_s19 }
  0x56   :  { %1321 = vmatpush3.bf16.msra.mxu0 %v1471_v9  ;;  %1341 = vmatpush3.bf16.msra.mxu1 %v1472_v10  ;;  %87 = vst [vmem:[#allocation2 + $0x3] sm:$0x1] %v86_v24  ;;  %v91_v30 = vld [vmem:[%s90_s21] sm:$0x1]  ;;  %s100_s4 = scalar_lea.vmem [#allocation5], %s1149_s1  ;;  %s105_s16 = scalar_lea.vmem [#allocation5], %s1150_s20 }
  0x57   :  { %1322 = vmatprep.subr.bf16.mxu0 %v1633_v0  ;;  %1342 = vmatprep.subr.bf16.mxu1 %v1633_v0  ;;  %v96_v31 = vld [vmem:[%s95_s22] sm:$0x1]  ;;  %92 = vst [vmem:[#allocation2 + $0x4] sm:$0x1] %v91_v30  ;;  %s1796_s28 = sld [smem:[#allocation4 + $0x26]]  ;;  %s364_s29 = scalar_lea.vmem [#allocation5], %s1175_s17 }
  0x58   :  { %97 = vst [vmem:[#allocation2 + $0x5] sm:$0x1] %v96_v31  ;;  %v101_v32 = vld [vmem:[%s100_s4] sm:$0x1]  ;;  %s1799_s2 = sld [smem:[#allocation4 + $0x2c]]  ;;  %s1801_s30 = sld [smem:[#allocation4 + $0x3]] }
  0x59   :  { %v167_v29 = vld [vmem:[#allocation2 + $0x8] sm:$0xff]  ;;  %v106_v33 = vld [vmem:[%s105_s16] sm:$0x1]  ;;  %102 = vst [vmem:[#allocation2 + $0x6] sm:$0x1] %v101_v32  ;;  %s1803_s7 = sld [smem:[#allocation4 + $0x9]] }
  0x5a   :  { %1323 = vmatpush3.bf16.msra.mxu0 %v1473_v11  ;;  %1343 = vmatpush3.bf16.msra.mxu1 %v1474_v15  ;;  %v168_v34 = vpack.c.bf16 %v167_v29, %v167_v29  ;;  %107 = vst [vmem:[#allocation2 + $0x7] sm:$0x1] %v106_v33  ;;  %v1485_v43 = vld [vmem:[#allocation8 + $0x98] sm:$0xff]   ;;  %s1805_s8 = sld [smem:[#allocation4 + $0xf]]  ;;  %v1487_v45 = vld [vmem:[#allocation8 + $0xa0] sm:$0xff]   ;;  %s1808_s9 = sld [smem:[#allocation4 + $0x15]] }
  0x5b   :  { %1324 = vmatprep.subr.bf16.mxu0 %v1633_v0  ;;  %1344 = vmatprep.subr.bf16.mxu1 %v1633_v0  ;;  %v365_v44 = vld [vmem:[%s364_s29] sm:$0x1]  ;;  %s370_s10 = scalar_lea.vmem [#allocation5], %s1176_s23  ;;  %s375_s11 = scalar_lea.vmem [#allocation5], %s1177_s24  ;;  %v1489_v50 = vld [vmem:[#allocation8 + $0xa8] sm:$0xff]   ;;  %v1488_v56 = vld [vmem:[#allocation8 + $0xe0] sm:$0xff]  }
  0x5c   :  { %367 = vst [vmem:[#allocation2 + $0x10] sm:$0x1] %v365_v44  ;;  %v1486_v46 = vld [vmem:[#allocation8 + $0xd8] sm:$0xff]   ;;  %s380_s12 = scalar_lea.vmem [#allocation5], %s1789_s25  ;;  %s385_s13 = scalar_lea.vmem [#allocation5], %s1792_s26  ;;  %v1491_v59 = vld [vmem:[#allocation8 + $0xb0] sm:$0xff]  }
  0x5d   :  { %v371_v47 = vld [vmem:[%s370_s10] sm:$0x1]  ;;  %s390_s14 = scalar_lea.vmem [#allocation5], %s1794_s27  ;;  %s395_s15 = scalar_lea.vmem [#allocation5], %s1796_s28  ;;  %v1490_v61 = vld [vmem:[#allocation8 + $0xe8] sm:$0xff]   ;;  %v1492_v62 = vld [vmem:[#allocation8 + $0xf0] sm:$0xff]  }
  0x5e   :  { %1325 = vmatpush3.bf16.msra.mxu0 %v1475_v25  ;;  %1345 = vmatpush3.bf16.msra.mxu1 %v1476_v26  ;;  %372 = vst [vmem:[#allocation2 + $0x11] sm:$0x1] %v371_v47  ;;  %v376_v48 = vld [vmem:[%s375_s11] sm:$0x1]  ;;  %s400_s0 = scalar_lea.vmem [#allocation5], %s1799_s2  ;;  %s513_s18 = scalar_lea.vmem [#allocation5], %s1801_s30 }
  0x5f   :  { %1326 = vmatprep.subr.bf16.mxu0 %v1633_v0  ;;  %1346 = vmatprep.subr.bf16.mxu1 %v1633_v0  ;;  %v381_v49 = vld [vmem:[%s380_s12] sm:$0x1]  ;;  %377 = vst [vmem:[#allocation2 + $0x12] sm:$0x1] %v376_v48  ;;  %s519_s19 = scalar_lea.vmem [#allocation5], %s1803_s7  ;;  %s1195_s21 = sld [smem:[#allocation4 + $0x1b]] }
  0x60   :  { %382 = vst [vmem:[#allocation2 + $0x13] sm:$0x1] %v381_v49  ;;  %v386_v51 = vld [vmem:[%s385_s13] sm:$0x1]  ;;  %s524_s1 = scalar_lea.vmem [#allocation5], %s1805_s8  ;;  %s529_s20 = scalar_lea.vmem [#allocation5], %s1808_s9 }
  0x61   :  { %v108_v37 = vld [vmem:[#allocation2] sm:$0xff]  ;;  %387 = vst [vmem:[#allocation2 + $0x14] sm:$0x1] %v386_v51  ;;  %s1196_s22 = sld [smem:[#allocation4 + $0x21]]  ;;  %s1197_s4 = sld [smem:[#allocation4 + $0x27]]  ;;  %v1495_v7 = vld [vmem:[#allocation8 + $0x100] sm:$0xff]  }
  0x62   :  { %1327 = vmatpush3.bf16.msra.mxu0 %v1477_v27  ;;  %1347 = vmatpush3.bf16.msra.mxu1 %v1478_v28  ;;  %v109_v39 = vpack.c.bf16 %v108_v37, %v108_v37  ;;  %v391_v52 = vld [vmem:[%s390_s14] sm:$0x1]  ;;  %s1198_s16 = sld [smem:[#allocation4 + $0x2d]]  ;;  %v1497_v9 = vld [vmem:[#allocation8 + $0x108] sm:$0xff]   ;;  %v1496_v10 = vld [vmem:[#allocation8 + $0x140] sm:$0xff]   ;;  %s1207_s26 = sld [smem:[#allocation4 + $0x4]] }
  0x63   :  { %1352 = vmatprep.subr.bf16.mxu0 %v1633_v0  ;;  %1372 = vmatprep.subr.bf16.mxu1 %v1633_v0  ;;  %392 = vst [vmem:[#allocation2 + $0x15] sm:$0x1] %v391_v52  ;;  %v396_v53 = vld [vmem:[%s395_s15] sm:$0x1]  ;;  %v1499_v12 = vld [vmem:[#allocation8 + $0x110] sm:$0xff]   ;;  %s1208_s27 = sld [smem:[#allocation4 + $0xa]] }
  0x64   :  { %397 = vst [vmem:[#allocation2 + $0x16] sm:$0x1] %v396_v53  ;;  %v401_v54 = vld [vmem:[%s400_s0] sm:$0x1]  ;;  %s1832_s28 = sld [smem:[#allocation4 + $0x10]]  ;;  %s1835_s29 = sld [smem:[#allocation4 + $0x16]] }
  0x65   :  { %1329 = vmatmul.mubr.bf16.vlgmr.msra.gmra.mrb[0].mxu0 %v168_v34  ;;  %1349 = vmatmul.mubr.bf16.vlgmr.msra.gmra.mrb[0].mxu1 %v109_v39  ;;  %v514_v55 = vld [vmem:[%s513_s18] sm:$0x1]  ;;  %402 = vst [vmem:[#allocation2 + $0x17] sm:$0x1] %v401_v54  ;;  %s534_s17 = scalar_lea.vmem [#allocation5], %s1195_s21  ;;  %s1837_s2 = sld [smem:[#allocation4 + $0x1c]] }
  0x66   :  { %1353 = vmatpush3.bf16.msra.mxu0 %v1479_v35  ;;  %1368 = vmatprep.mubr.msk.bf16.mxu0 %vm1634_vm0, %v1633_v0  ;;  %516 = vst [vmem:[#allocation2 + $0x18] sm:$0x1] %v514_v55  ;;  %v520_v57 = vld [vmem:[%s519_s19] sm:$0x1]  ;;  %v1498_v14 = vld [vmem:[#allocation8 + $0x148] sm:$0xff]   ;;  %s1839_s30 = sld [smem:[#allocation4 + $0x22]] }
  0x67   :  { %1354 = vmatprep.subr.bf16.mxu0 %v1633_v0  ;;  %1373 = vmatpush3.bf16.msra.mxu1 %v1480_v38  ;;  %v525_v58 = vld [vmem:[%s524_s1] sm:$0x1]  ;;  %521 = vst [vmem:[#allocation2 + $0x19] sm:$0x1] %v520_v57  ;;  %s539_s23 = scalar_lea.vmem [#allocation5], %s1196_s22  ;;  %s544_s24 = scalar_lea.vmem [#allocation5], %s1197_s4 }
  0x68   :  { %1388 = vmatprep.mubr.msk.bf16.mxu1 %vm1634_vm0, %v1633_v0  ;;  %1374 = vmatprep.subr.bf16.mxu1 %v1633_v0  ;;  %526 = vst [vmem:[#allocation2 + $0x1a] sm:$0x1] %v525_v58  ;;  %v530_v60 = vld [vmem:[%s529_s20] sm:$0x1]  ;;  %s549_s25 = scalar_lea.vmem [#allocation5], %s1198_s16  ;;  %s1841_s7 = sld [smem:[#allocation4 + $0x28]] }
  0x69   :  { %531 = vst [vmem:[#allocation2 + $0x1b] sm:$0x1] %v530_v60  ;;  %v1493_v63 = vld [vmem:[#allocation8 + $0xb8] sm:$0xff]   ;;  %s1844_s8 = sld [smem:[#allocation4 + $0x2e]]  ;;  %s1846_s9 = sld [smem:[#allocation4 + $0x5]]  ;;  %v1500_v16 = vld [vmem:[#allocation8 + $0x150] sm:$0xff]  }
  0x6a   :  { %1355 = vmatpush3.bf16.msra.mxu0 %v1481_v36  ;;  %v535_v2 = vld [vmem:[%s534_s17] sm:$0x1]  ;;  %s1850_s10 = sld [smem:[#allocation4 + $0xb]]  ;;  %s1852_s11 = sld [smem:[#allocation4 + $0x11]]  ;;  %v1503_v20 = vld [vmem:[#allocation8 + $0x120] sm:$0xff]   ;;  %v1505_v30 = vld [vmem:[#allocation8 + $0x128] sm:$0xff]  }
  0x6b   :  { %1356 = vmatprep.subr.bf16.mxu0 %v1633_v0  ;;  %1375 = vmatpush3.bf16.msra.mxu1 %v1482_v41  ;;  %v540_v3 = vld [vmem:[%s539_s23] sm:$0x1]  ;;  %536 = vst [vmem:[#allocation2 + $0x1c] sm:$0x1] %v535_v2  ;;  %s1855_s12 = sld [smem:[#allocation4 + $0x17]]  ;;  %s662_s13 = scalar_lea.vmem [#allocation5], %s1207_s26 }
  0x6c   :  { %1376 = vmatprep.subr.bf16.mxu1 %v1633_v0  ;;  %v403_v1 = vld [vmem:[#allocation2 + $0x10] sm:$0xff]  ;;  %541 = vst [vmem:[#allocation2 + $0x1d] sm:$0x1] %v540_v3  ;;  %v545_v4 = vld [vmem:[%s544_s24] sm:$0x1]  ;;  %s668_s14 = scalar_lea.vmem [#allocation5], %s1208_s27 }
  0x6d   :  { %v550_v5 = vld [vmem:[%s549_s25] sm:$0x1]  ;;  %v404_v6 = vpack.c.bf16 %v403_v1, %v403_v1  ;;  %546 = vst [vmem:[#allocation2 + $0x1e] sm:$0x1] %v545_v4  ;;  %s673_s15 = scalar_lea.vmem [#allocation5], %s1832_s28  ;;  %s678_s0 = scalar_lea.vmem [#allocation5], %s1835_s29 }
  0x6e   :  { %1357 = vmatpush3.bf16.msra.mxu0 %v1483_v40  ;;  %551 = vst [vmem:[#allocation2 + $0x1f] sm:$0x1] %v550_v5  ;;  %v1494_v8 = vld [vmem:[#allocation8 + $0xf8] sm:$0xff]   ;;  %s683_s18 = scalar_lea.vmem [#allocation5], %s1837_s2  ;;  %s688_s19 = scalar_lea.vmem [#allocation5], %s1839_s30  ;;  %v1504_v32 = vld [vmem:[#allocation8 + $0x160] sm:$0xff]  }
  0x6f   :  { %1358 = vmatprep.subr.bf16.mxu0 %v1633_v0  ;;  %1377 = vmatpush3.bf16.msra.mxu1 %v1484_v42  ;;  %v1501_v15 = vld [vmem:[#allocation8 + $0x118] sm:$0xff]   ;;  %s693_s1 = scalar_lea.vmem [#allocation5], %s1841_s7  ;;  %s698_s20 = scalar_lea.vmem [#allocation5], %s1844_s8  ;;  %v1507_v33 = vld [vmem:[#allocation8 + $0x130] sm:$0xff]   ;;  %v1506_v36 = vld [vmem:[#allocation8 + $0x168] sm:$0xff]  }
  0x70   :  { %1378 = vmatprep.subr.bf16.mxu1 %v1633_v0  ;;  %v663_v17 = vld [vmem:[%s662_s13] sm:$0x1]  ;;  %s811_s21 = scalar_lea.vmem [#allocation5], %s1846_s9  ;;  %s817_s22 = scalar_lea.vmem [#allocation5], %s1850_s10  ;;  %v1508_v41 = vld [vmem:[#allocation8 + $0x170] sm:$0xff]   ;;  %v1512_v47 = vld [vmem:[#allocation10 + $0x8] sm:$0xff]  }
  0x71   :  { %665 = vst [vmem:[#allocation2 + $0x20] sm:$0x1] %v663_v17  ;;  %v669_v18 = vld [vmem:[%s668_s14] sm:$0x1]  ;;  %s822_s4 = scalar_lea.vmem [#allocation5], %s1852_s11  ;;  %s827_s16 = scalar_lea.vmem [#allocation5], %s1855_s12 }
  0x72   :  { %1359 = vmatpush3.bf16.msra.mxu0 %v1485_v43  ;;  %v674_v19 = vld [vmem:[%s673_s15] sm:$0x1]  ;;  %670 = vst [vmem:[#allocation2 + $0x21] sm:$0x1] %v669_v18  ;;  %s1227_s17 = sld [smem:[#allocation4 + $0x1d]]  ;;  %s1228_s23 = sld [smem:[#allocation4 + $0x23]] }
  0x73   :  { %1360 = vmatprep.subr.bf16.mxu0 %v1633_v0  ;;  %1379 = vmatpush3.bf16.msra.mxu1 %v1486_v46  ;;  %675 = vst [vmem:[#allocation2 + $0x22] sm:$0x1] %v674_v19  ;;  %v679_v21 = vld [vmem:[%s678_s0] sm:$0x1]  ;;  %s1229_s24 = sld [smem:[#allocation4 + $0x29]]  ;;  %s1230_s25 = sld [smem:[#allocation4 + $0x2f]] }
  0x74   :  { %1380 = vmatprep.subr.bf16.mxu1 %v1633_v0  ;;  %v684_v22 = vld [vmem:[%s683_s18] sm:$0x1]  ;;  %680 = vst [vmem:[#allocation2 + $0x23] sm:$0x1] %v679_v21  ;;  %v1511_v46 = vld [vmem:[#allocation10] sm:$0xff]   ;;  %v1513_v48 = vld [vmem:[#allocation10 + $0x10] sm:$0xff]  }
  0x75   :  { %v552_v11 = vld [vmem:[#allocation2 + $0x18] sm:$0xff]  ;;  %685 = vst [vmem:[#allocation2 + $0x24] sm:$0x1] %v684_v22  ;;  %v689_v23 = vld [vmem:[%s688_s19] sm:$0x1]  ;;  %v1516_v51 = vld [vmem:[#allocation10 + $0x28] sm:$0xff]  }
  0x76   :  { %1361 = vmatpush3.bf16.msra.mxu0 %v1487_v45  ;;  %v553_v13 = vpack.c.bf16 %v552_v11, %v552_v11  ;;  %v694_v24 = vld [vmem:[%s693_s1] sm:$0x1]  ;;  %690 = vst [vmem:[#allocation2 + $0x25] sm:$0x1] %v689_v23  ;;  %v1517_v52 = vld [vmem:[#allocation10 + $0x30] sm:$0xff]   ;;  %s1635_s9 = smov [#allocation11]  }
  0x77   :  { %1362 = vmatprep.subr.bf16.mxu0 %v1633_v0  ;;  %1381 = vmatpush3.bf16.msra.mxu1 %v1488_v56  ;;  %695 = vst [vmem:[#allocation2 + $0x26] sm:$0x1] %v694_v24  ;;  %v699_v25 = vld [vmem:[%s698_s20] sm:$0x1]  ;;  %s1086_s10 = sshll.u32 %s1635_s9, 4  ;;  %s1087_s10 = int_to_ptr.vmem [resolvable:$true] %s1086_s10 }
  0x78   :  { %1382 = vmatprep.subr.bf16.mxu1 %v1633_v0  ;;  %v812_v26 = vld [vmem:[%s811_s21] sm:$0x1]  ;;  %700 = vst [vmem:[#allocation2 + $0x27] sm:$0x1] %v699_v25  ;;  %s832_s26 = scalar_lea.vmem [#allocation5], %s1227_s17  ;;  %s837_s27 = scalar_lea.vmem [#allocation5], %s1228_s23 }
  0x79   :  { %v1502_v27 = vld [vmem:[#allocation8 + $0x158] sm:$0xff]   ;;  %814 = vst [vmem:[#allocation2 + $0x28] sm:$0x1] %v812_v26  ;;  %s842_s28 = scalar_lea.vmem [#allocation5], %s1229_s24  ;;  %s847_s29 = scalar_lea.vmem [#allocation5], %s1230_s25 }
  0x7a   :  { %1363 = vmatpush3.bf16.msra.mxu0 %v1489_v50  ;;  %v818_v28 = vld [vmem:[%s817_s22] sm:$0x1]  ;;  %v1515_v50 = vld [vmem:[#allocation10 + $0x20] sm:$0xff]   ;;  %p1600_p0 = scmp.lt.s32.totalorder %s1087_s10, %s1087_s10 }
  0x7b   :  { %1364 = vmatprep.subr.bf16.mxu0 %v1633_v0  ;;  %1383 = vmatpush3.bf16.msra.mxu1 %v1490_v61  ;;  %v823_v29 = vld [vmem:[%s822_s4] sm:$0x1]  ;;  %819 = vst [vmem:[#allocation2 + $0x29] sm:$0x1] %v818_v28 }
  0x7c   :  { %1384 = vmatprep.subr.bf16.mxu1 %v1633_v0  ;;  %824 = vst [vmem:[#allocation2 + $0x2a] sm:$0x1] %v823_v29  ;;  %v828_v31 = vld [vmem:[%s827_s16] sm:$0x1] }
  0x7d   :  { %829 = vst [vmem:[#allocation2 + $0x2b] sm:$0x1] %v828_v31  ;;  %v833_v34 = vld [vmem:[%s832_s26] sm:$0x1] }
  0x7e   :  { %1365 = vmatpush3.bf16.msra.mxu0 %v1491_v59  ;;  %v838_v35 = vld [vmem:[%s837_s27] sm:$0x1]  ;;  %834 = vst [vmem:[#allocation2 + $0x2c] sm:$0x1] %v833_v34 }
  0x7f   :  { %1366 = vmatprep.subr.bf16.mxu0 %v1633_v0  ;;  %1385 = vmatpush3.bf16.msra.mxu1 %v1492_v62  ;;  %839 = vst [vmem:[#allocation2 + $0x2d] sm:$0x1] %v838_v35  ;;  %v843_v37 = vld [vmem:[%s842_s28] sm:$0x1] }
  0x80   :  { %1386 = vmatprep.subr.bf16.mxu1 %v1633_v0  ;;  %v848_v38 = vld [vmem:[%s847_s29] sm:$0x1]  ;;  %844 = vst [vmem:[#allocation2 + $0x2e] sm:$0x1] %v843_v37 }
  0x81   :  { %849 = vst [vmem:[#allocation2 + $0x2f] sm:$0x1] %v848_v38  ;;  %v1509_v39 = vld [vmem:[#allocation8 + $0x138] sm:$0xff]  }
  0x82   :  { %1367 = vmatpush3.bf16.msra.mxu0 %v1493_v63  ;;  %v701_v40 = vld [vmem:[#allocation2 + $0x20] sm:$0xff] }
  0x83   :  { %1392 = vmatprep.subr.bf16.mxu0 %v1633_v0  ;;  %1387 = vmatpush3.bf16.msra.mxu1 %v1494_v8  ;;  %v702_v42 = vpack.c.bf16 %v701_v40, %v701_v40  ;;  %v1510_v43 = vld [vmem:[#allocation8 + $0x178] sm:$0xff]  }
  0x84   :  { %1412 = vmatprep.subr.bf16.mxu1 %v1633_v0  ;;  %v1514_v49 = vld [vmem:[#allocation10 + $0x18] sm:$0xff]  }
  0x85   :  { %1369 = vmatmul.mubr.bf16.vlgmr.msra.gmra.mrb[4].mxu0 %v404_v6  ;;  %v1518_v53 = vld [vmem:[#allocation10 + $0x38] sm:$0xff]  }
  0x86   :  { %1393 = vmatpush3.bf16.msra.mxu0 %v1495_v7  ;;  %1408 = vmatprep.mubr.msk.bf16.mxu0 %vm1634_vm0, %v1633_v0  ;;  %v1240_v23 = vld [vmem:[%s1911_s5] ss:$0 sm:$0xff] }
  0x87   :  { %1394 = vmatprep.subr.bf16.mxu0 %v1633_v0  ;;  %1389 = vmatmul.mubr.bf16.vlgmr.msra.gmra.mrb[4].mxu1 %v553_v13 }
  0x88   :  { %1413 = vmatpush3.bf16.msra.mxu1 %v1496_v10  ;;  %1428 = vmatprep.mubr.msk.bf16.mxu1 %vm1634_vm0, %v1633_v0  ;;  %v850_v44 = vld [vmem:[#allocation2 + $0x28] sm:$0xff] }
  0x89   :  { %1414 = vmatprep.subr.bf16.mxu1 %v1633_v0  ;;  %v851_v45 = vpack.c.bf16 %v850_v44, %v850_v44 }
  0x8a   :  { %1395 = vmatpush3.bf16.msra.mxu0 %v1497_v9 }
  0x8b   :  { %1396 = vmatprep.subr.bf16.mxu0 %v1633_v0 }
  0x8c   :  { %1415 = vmatpush3.bf16.msra.mxu1 %v1498_v14 }
  0x8d   :  { %1416 = vmatprep.subr.bf16.mxu1 %v1633_v0 }
  0x8e   :  { %1397 = vmatpush3.bf16.msra.mxu0 %v1499_v12 }
  0x8f   :  { %1398 = vmatprep.subr.bf16.mxu0 %v1633_v0 }
  0x90   :  { %1417 = vmatpush3.bf16.msra.mxu1 %v1500_v16 }
  0x91   :  { %1418 = vmatprep.subr.bf16.mxu1 %v1633_v0 }
  0x92   :  { %1399 = vmatpush3.bf16.msra.mxu0 %v1501_v15  ;;  %v1239_v15 = vld [vmem:[%s1909_s3] ss:$0 sm:$0xff]  ;;  %s1595_s3 = scalar_lea.vmem %s1087_s10, 128 }
  0x93   :  { %1400 = vmatprep.subr.bf16.mxu0 %v1633_v0  ;;  %p1596_p13 = scmp.ne.s32.totalorder %s1087_s10, %s1595_s3  ;;  %p1601_p1 = scmp.lt.s32.totalorder %s1595_s3, %s1595_s3 }
  0x94   :  { %1419 = vmatpush3.bf16.msra.mxu1 %v1502_v27 }
  0x95   :  { %1420 = vmatprep.subr.bf16.mxu1 %v1633_v0  ;;  %p1602_p2 = por %p1601_p1, %p1600_p0 }
  0x96   :  { %1401 = vmatpush3.bf16.msra.mxu0 %v1503_v20 }
  0x97   :  { %1402 = vmatprep.subr.bf16.mxu0 %v1633_v0  ;;  %p1603_p3 = pnand %p1602_p2, %p1596_p13 }
  0x98   :  { %1421 = vmatpush3.bf16.msra.mxu1 %v1504_v32 }
  0x99   :  { %1422 = vmatprep.subr.bf16.mxu1 %v1633_v0 }
  0x9a   :  { %1403 = vmatpush3.bf16.msra.mxu0 %v1505_v30 }
  0x9b   :  { %1404 = vmatprep.subr.bf16.mxu0 %v1633_v0 }
  0x9c   :  { %1423 = vmatpush3.bf16.msra.mxu1 %v1506_v36 }
  0x9d   :  { %1424 = vmatprep.subr.bf16.mxu1 %v1633_v0 }
  0x9e   :  { %1405 = vmatpush3.bf16.msra.mxu0 %v1507_v33 }
  0x9f   :  { %1406 = vmatprep.subr.bf16.mxu0 %v1633_v0 }
  0xa0   :  { %1425 = vmatpush3.bf16.msra.mxu1 %v1508_v41 }
  0xa1   :  { %1426 = vmatprep.subr.bf16.mxu1 %v1633_v0 }
  0xa2   :  { %1407 = vmatpush3.bf16.msra.mxu0 %v1509_v39 }
  0xa3   :  { %1432 = vmatprep.subr.bf16.mxu0 %v1633_v0 }
  0xa4   :  { %1427 = vmatpush3.bf16.msra.mxu1 %v1510_v43 }
  0xa5   :  { %1409 = vmatmul.mubr.bf16.vlgmr.msra.gmra.mrb[8].mxu0 %v702_v42 }
  0xa6   :  { %1448 = vmatprep.mubr.msk.bf16.mxu0 %vm1634_vm0, %v1633_v0  ;;  %1433 = vmatpush3.bf16.msra.mxu0 %v1511_v46 }
  0xa7   :  { %1429 = vmatmul.mubr.bf16.vlgmr.msra.gmra.mrb[8].mxu1 %v851_v45  ;;  %1434 = vmatprep.subr.bf16.mxu0 %v1633_v0 }
  0xaa   :  { %1435 = vmatpush3.bf16.msra.mxu0 %v1512_v47 }
  0xab   :  { %1436 = vmatprep.subr.bf16.mxu0 %v1633_v0 }
  0xae   :  { %1437 = vmatpush3.bf16.msra.mxu0 %v1513_v48 }
  0xaf   :  { %1438 = vmatprep.subr.bf16.mxu0 %v1633_v0 }
  0xb2   :  { %1439 = vmatpush3.bf16.msra.mxu0 %v1514_v49 }
  0xb3   :  { %1440 = vmatprep.subr.bf16.mxu0 %v1633_v0 }
  0xb6   :  { %1441 = vmatpush3.bf16.msra.mxu0 %v1515_v50 }
  0xb7   :  { %1442 = vmatprep.subr.bf16.mxu0 %v1633_v0 }
  0xba   :  { %1443 = vmatpush3.bf16.msra.mxu0 %v1516_v51 }
  0xbb   :  { %1444 = vmatprep.subr.bf16.mxu0 %v1633_v0 }
  0xbe   :  { %1445 = vmatpush3.bf16.msra.mxu0 %v1517_v52 }
  0xbf   :  { %1446 = vmatprep.subr.bf16.mxu0 %v1633_v0 }
  0xc2   :  { %1447 = vmatpush3.bf16.msra.mxu0 %v1518_v53 }
 0x138   :  { %v268_v54 = vpop.f32.mrb[0].mxu0  ;;  %v356_v58 = vpop.f32.mrb[0].mxu1 }
 0x139   :  { %v1330_v55 = vpop.f32.mrb[1].mxu0  ;;  %v357_v59 = vadd.f32 %v356_v58, %v268_v54  ;;  %v1350_v60 = vpop.f32.mrb[1].mxu1 }
 0x13a   :  { %v271_v56 = vpop.f32.mrb[2].mxu0  ;;  %v359_v61 = vpop.f32.mrb[2].mxu1 }
 0x13b   :  { %v1331_v57 = vpop.f32.mrb[3].mxu0  ;;  %v1351_v62 = vpop.f32.mrb[3].mxu1 }
 0x158   :  { %v504_v63 = vpop.f32.mrb[4].mxu0 }
 0x159   :  { %v510_v1 = vadd.f32 %v504_v63, %v357_v59  ;;  %v1370_v2 = vpop.f32.mrb[5].mxu0 }
 0x15a   :  { %v507_v3 = vpop.f32.mrb[6].mxu0  ;;  %v653_v5 = vpop.f32.mrb[4].mxu1 }
 0x15b   :  { %v1371_v4 = vpop.f32.mrb[7].mxu0  ;;  %v659_v6 = vadd.f32 %v653_v5, %v510_v1  ;;  %v1390_v7 = vpop.f32.mrb[5].mxu1 }
 0x15c   :  { %v656_v0 = vpop.f32.mrb[6].mxu1 }
 0x15d   :  { %v1391_v8 = vpop.f32.mrb[7].mxu1 }
 0x178   :  { %v802_v9 = vpop.f32.mrb[8].mxu0 }
 0x179   :  { %v808_v10 = vadd.f32 %v802_v9, %v659_v6  ;;  %v1410_v11 = vpop.f32.mrb[9].mxu0 }
 0x17a   :  { %v805_v12 = vpop.f32.mrb[10].mxu0  ;;  %v951_v14 = vpop.f32.mrb[8].mxu1 }
 0x17b   :  { %v1411_v13 = vpop.f32.mrb[11].mxu0  ;;  %v957_v16 = vadd.f32 %v951_v14, %v808_v10  ;;  %v1430_v17 = vpop.f32.mrb[9].mxu1 }
 0x17c   :  { %v954_v18 = vpop.f32.mrb[10].mxu1 }
 0x17d   :  { %v965_v19 = vadd.f32 %v1239_v15, %v957_v16  ;;  %v1431_v20 = vpop.f32.mrb[11].mxu1 }
 0x17f   :  { %v966_v21 = vmax.f32 %v965_v19, 0.0 }
 0x181   :  { %v967_v22 = vpack.c.bf16 %v966_v21, %v966_v21 }
 0x183   :  { %1449 = vmatmul.mubr.bf16.vlgmr.msra.gmra.mrb[12].mxu0 %v967_v22 }
 0x256   :  { %v1073_v24 = vpop.f32.mrb[12].mxu0 }
 0x257   :  { %v1074_v25 = vadd.f32 %v1240_v23, %v1073_v24  ;;  %v1450_v26 = vpop.f32.mrb[13].mxu0 }
 0x258   :  { %v1076_v27 = vpop.f32.mrb[14].mxu0 }
 0x259   :  { %1079 = vst [vmem:[#allocation11] sm:$0xff] %v1074_v25  ;;  %v1451_v28 = vpop.f32.mrb[15].mxu0 }
 0x25a   :  { %1606 = shalt.err (!%p1603_p3)
}
 0x25b   :  { %s1607_s5 = scalar_lea.hbm %s1912_s6, 128 }
 0x25c   :  { %p1608_p4 = scmp.ne.s32.totalorder %s1912_s6, %s1607_s5  ;;  %p1611_p5 = scmp.lt.u32.totalorder %s1607_s5, %s1912_s6 }
 0x25e   :  { %p1613_p6 = pnand %p1611_p5, %p1608_p4 }
 0x260   :  { %1616 = shalt.err (!%p1613_p6)
}
 0x261   :  { %1089 = dma.vmem_to_hbm [thread:$0]  %s1087_s10, 128, %s1912_s6, [#allocation7]  }
 0x262   :  { %1623 = dma.done.wait [#allocation7], 128  }
 0x263   :  { %1624 = vsyncadd [#allocation7], 4294967168 }
 0x264   :  { %1093 = vsyncpa [#allocation6], 1 }
 0x265   :  { %1094 = vsyncpa [#allocation9], 1 }
 0x266   :  { %1095 = vsyncpa [#allocation7], 1 }

</bundles_post_ra>
